<compile_context>
chip_gen: v7x
topology: tpu7x:2x2x1
jax: 0.10.0
libtpu: 0.0.40
codegen_flags: <defaults>
</compile_context>

<pallas_src>
import functools

import jax
import jax.numpy as jnp
from jax import lax
from jax.experimental import pallas as pl
from jax.experimental.pallas import tpu as pltpu


_ROW_TILE = 256                 # token-rows per tile (multiple of 8)
_COL_TILE = 256                 # output-feature columns per tile (multiple of 128; MXU friendly)
_VMEM_LIMIT = 48 * 1024 * 1024  # explicit scoped-VMEM budget (fits v7x 64 MiB, v5e/v6e 128 MiB)
_LN_EPS = 1e-6


def _cparams(dimension_semantics):
    return pltpu.CompilerParams(
        dimension_semantics=dimension_semantics,
        vmem_limit_bytes=_VMEM_LIMIT,
    )


# --------------------------------------------------------------------------- #
# patch embed: patches @ W + b, prepend (cls + pos_cls), add pos_patch        #
# --------------------------------------------------------------------------- #
def _patch_embed_kernel(p_ref, w_ref, b_ref, cls_ref, pc_ref, pp_ref, o_ref):
    emb = jnp.dot(p_ref[...], w_ref[...], preferred_element_type=jnp.float32)
    emb = emb + b_ref[...].astype(jnp.float32) + pp_ref[...].astype(jnp.float32)
    cls_row = cls_ref[...].astype(jnp.float32) + pc_ref[...].astype(jnp.float32)
    o_ref[0:1, :] = cls_row.astype(o_ref.dtype)
    o_ref[1:, :] = emb.astype(o_ref.dtype)


def patch_embed(patches, w, b, cls, pos_cls, pos_patch):
    B, Np, CPP = patches.shape
    D = w.shape[1]
    N1 = Np + 1
    return pl.pallas_call(
        _patch_embed_kernel,
        out_shape=jax.ShapeDtypeStruct((B, N1, D), w.dtype),
        grid=(B,),
        in_specs=[
            pl.BlockSpec((None, Np, CPP), lambda b_: (b_, 0, 0)),
            pl.BlockSpec((CPP, D), lambda b_: (0, 0)),
            pl.BlockSpec((1, D), lambda b_: (0, 0)),
            pl.BlockSpec((1, D), lambda b_: (0, 0)),
            pl.BlockSpec((1, D), lambda b_: (0, 0)),
            pl.BlockSpec((Np, D), lambda b_: (0, 0)),
        ],
        out_specs=pl.BlockSpec((None, N1, D), lambda b_: (b_, 0, 0)),
        compiler_params=_cparams(("parallel",)),
    )(patches, w, b.reshape(1, -1), cls, pos_cls, pos_patch)


# --------------------------------------------------------------------------- #
# fused LayerNorm + matmul + bias  (used for the QKV projection)              #
# --------------------------------------------------------------------------- #
def _ln_matmul_kernel(x_ref, g_ref, bt_ref, w_ref, wb_ref, o_ref, h_ref, *, eps):
    # LN of this row-tile is computed once (j == 0) and reused for every output-column tile.
    @pl.when(pl.program_id(1) == 0)
    def _():
        x = x_ref[...].astype(jnp.float32)
        mu = jnp.mean(x, axis=-1, keepdims=True)
        var = jnp.mean((x - mu) ** 2, axis=-1, keepdims=True)
        xn = (x - mu) * lax.rsqrt(var + eps)
        h_ref[...] = (xn * g_ref[...].astype(jnp.float32)
                      + bt_ref[...].astype(jnp.float32)).astype(h_ref.dtype)

    acc = jnp.dot(h_ref[...], w_ref[...], preferred_element_type=jnp.float32)
    o_ref[...] = (acc + wb_ref[...].astype(jnp.float32)).astype(o_ref.dtype)


def ln_matmul(x, gamma, beta, w, wb, *, eps=_LN_EPS):
    M, K = x.shape
    N = w.shape[1]
    tm = min(_ROW_TILE, M)
    tn = min(_COL_TILE, N)
    grid = (pl.cdiv(M, tm), pl.cdiv(N, tn))
    return pl.pallas_call(
        functools.partial(_ln_matmul_kernel, eps=eps),
        out_shape=jax.ShapeDtypeStruct((M, N), x.dtype),
        grid=grid,
        in_specs=[
            pl.BlockSpec((tm, K), lambda i, j: (i, 0)),
            pl.BlockSpec((1, K), lambda i, j: (0, 0)),
            pl.BlockSpec((1, K), lambda i, j: (0, 0)),
            pl.BlockSpec((K, tn), lambda i, j: (0, j)),
            pl.BlockSpec((1, tn), lambda i, j: (0, j)),
        ],
        out_specs=pl.BlockSpec((tm, tn), lambda i, j: (i, j)),
        scratch_shapes=[pltpu.VMEM((tm, K), jnp.bfloat16)],
        compiler_params=_cparams(("parallel", "arbitrary")),
    )(x, gamma.reshape(1, -1), beta.reshape(1, -1), w, wb.reshape(1, -1))


# --------------------------------------------------------------------------- #
# fused LayerNorm + fc1 (both SwiGLU halves) + SiLU gate                      #
# SwiGLUPacked / GluMlp(gate_last=False): silu(x1) * x2                        #
# --------------------------------------------------------------------------- #
def _ln_swiglu_kernel(x_ref, g_ref, bt_ref, w1_ref, b1_ref, w2_ref, b2_ref,
                      o_ref, h_ref, *, eps):
    @pl.when(pl.program_id(1) == 0)
    def _():
        x = x_ref[...].astype(jnp.float32)
        mu = jnp.mean(x, axis=-1, keepdims=True)
        var = jnp.mean((x - mu) ** 2, axis=-1, keepdims=True)
        xn = (x - mu) * lax.rsqrt(var + eps)
        h_ref[...] = (xn * g_ref[...].astype(jnp.float32)
                      + bt_ref[...].astype(jnp.float32)).astype(h_ref.dtype)

    h = h_ref[...]
    a1 = jnp.dot(h, w1_ref[...], preferred_element_type=jnp.float32) \
        + b1_ref[...].astype(jnp.float32)
    a2 = jnp.dot(h, w2_ref[...], preferred_element_type=jnp.float32) \
        + b2_ref[...].astype(jnp.float32)
    o_ref[...] = (jax.nn.silu(a1) * a2).astype(o_ref.dtype)


def ln_swiglu(x, gamma, beta, w1, b1, w2, b2, *, eps=_LN_EPS):
    M, K = x.shape
    N = w1.shape[1]
    tm = min(_ROW_TILE, M)
    tn = min(_COL_TILE, N)
    grid = (pl.cdiv(M, tm), pl.cdiv(N, tn))
    return pl.pallas_call(
        functools.partial(_ln_swiglu_kernel, eps=eps),
        out_shape=jax.ShapeDtypeStruct((M, N), x.dtype),
        grid=grid,
        in_specs=[
            pl.BlockSpec((tm, K), lambda i, j: (i, 0)),
            pl.BlockSpec((1, K), lambda i, j: (0, 0)),
            pl.BlockSpec((1, K), lambda i, j: (0, 0)),
            pl.BlockSpec((K, tn), lambda i, j: (0, j)),
            pl.BlockSpec((1, tn), lambda i, j: (0, j)),
            pl.BlockSpec((K, tn), lambda i, j: (0, j)),
            pl.BlockSpec((1, tn), lambda i, j: (0, j)),
        ],
        out_specs=pl.BlockSpec((tm, tn), lambda i, j: (i, j)),
        scratch_shapes=[pltpu.VMEM((tm, K), jnp.bfloat16)],
        compiler_params=_cparams(("parallel", "arbitrary")),
    )(x, gamma.reshape(1, -1), beta.reshape(1, -1),
      w1, b1.reshape(1, -1), w2, b2.reshape(1, -1))


# --------------------------------------------------------------------------- #
# matmul + bias + residual (residual buffer aliased to the output)            #
# --------------------------------------------------------------------------- #
def _matmul_bias_res_kernel(x_ref, w_ref, b_ref, r_ref, o_ref):
    acc = jnp.dot(x_ref[...], w_ref[...], preferred_element_type=jnp.float32)
    o_ref[...] = (r_ref[...].astype(jnp.float32) + acc
                  + b_ref[...].astype(jnp.float32)).astype(o_ref.dtype)


def matmul_bias_residual(x, w, b, residual):
    M, K = x.shape
    N = w.shape[1]
    tm = min(_ROW_TILE, M)
    tn = min(_COL_TILE, N)
    grid = (pl.cdiv(M, tm), pl.cdiv(N, tn))
    return pl.pallas_call(
        _matmul_bias_res_kernel,
        out_shape=jax.ShapeDtypeStruct((M, N), residual.dtype),
        grid=grid,
        in_specs=[
            pl.BlockSpec((tm, K), lambda i, j: (i, 0)),
            pl.BlockSpec((K, tn), lambda i, j: (0, j)),
            pl.BlockSpec((1, tn), lambda i, j: (0, j)),
            pl.BlockSpec((tm, tn), lambda i, j: (i, j)),
        ],
        out_specs=pl.BlockSpec((tm, tn), lambda i, j: (i, j)),
        input_output_aliases={3: 0},
        compiler_params=_cparams(("parallel", "parallel")),
    )(x, w, b.reshape(1, -1), residual)


# --------------------------------------------------------------------------- #
# multi-head self-attention: grid over images, head split done in-kernel      #
# --------------------------------------------------------------------------- #
def _attention_kernel(qkv_ref, o_ref, *, heads, dh, scale):
    D = heads * dh
    qkv = qkv_ref[...]                                   # [N1, 3D] bf16
    for h in range(heads):                               # static unroll over heads
        s0, s1 = h * dh, (h + 1) * dh
        qh = qkv[:, s0:s1] * scale                       # fold softmax scale into q
        kh = qkv[:, D + s0:D + s1]
        vh = qkv[:, 2 * D + s0:2 * D + s1]
        s = lax.dot_general(qh, kh, (((1,), (1,)), ((), ())),
                            preferred_element_type=jnp.float32)   # [N1, N1] f32
        m = jnp.max(s, axis=-1, keepdims=True)
        p = jnp.exp(s - m)
        l = jnp.sum(p, axis=-1, keepdims=True)
        p = (p * pl.reciprocal(l, approx=True)).astype(qkv.dtype)
        oh = jnp.dot(p, vh, preferred_element_type=jnp.float32)   # [N1, dh]
        o_ref[:, s0:s1] = oh.astype(o_ref.dtype)


def attention(qkv, *, heads, dh):
    B, N1, threeD = qkv.shape
    D = heads * dh
    return pl.pallas_call(
        functools.partial(_attention_kernel, heads=heads, dh=dh, scale=dh ** -0.5),
        out_shape=jax.ShapeDtypeStruct((B, N1, D), qkv.dtype),
        grid=(B,),
        in_specs=[pl.BlockSpec((None, N1, threeD), lambda b_: (b_, 0, 0))],
        out_specs=pl.BlockSpec((None, N1, D), lambda b_: (b_, 0, 0)),
        compiler_params=_cparams(("parallel",)),
    )(qkv)


# --------------------------------------------------------------------------- #
# final LayerNorm + (cls token, mean patch token) pooling                     #
# --------------------------------------------------------------------------- #
def _ln_pool_kernel(t_ref, g_ref, bt_ref, o_ref, *, eps):
    t = t_ref[...].astype(jnp.float32)                   # [N1, D]
    mu = jnp.mean(t, axis=-1, keepdims=True)
    var = jnp.mean((t - mu) ** 2, axis=-1, keepdims=True)
    tn_ = (t - mu) * lax.rsqrt(var + eps)
    tn_ = tn_ * g_ref[...].astype(jnp.float32) + bt_ref[...].astype(jnp.float32)
    D = tn_.shape[-1]
    o_ref[:, :D] = tn_[0:1, :].astype(o_ref.dtype)
    o_ref[:, D:] = jnp.mean(tn_[1:, :], axis=0, keepdims=True).astype(o_ref.dtype)


def ln_pool(tokens, gamma, beta, *, eps=_LN_EPS):
    B, N1, D = tokens.shape
    out = pl.pallas_call(
        functools.partial(_ln_pool_kernel, eps=eps),
        out_shape=jax.ShapeDtypeStruct((B, 1, 2 * D), jnp.float32),
        grid=(B,),
        in_specs=[
            pl.BlockSpec((None, N1, D), lambda b_: (b_, 0, 0)),
            pl.BlockSpec((1, D), lambda b_: (0, 0)),
            pl.BlockSpec((1, D), lambda b_: (0, 0)),
        ],
        out_specs=pl.BlockSpec((None, 1, 2 * D), lambda b_: (b_, 0, 0)),
        compiler_params=_cparams(("parallel",)),
    )(tokens, gamma.reshape(1, -1), beta.reshape(1, -1))
    return out.reshape(B, 2 * D)


# --------------------------------------------------------------------------- #
# standalone LayerNorm (for patch_tokens / class_token modes)                 #
# --------------------------------------------------------------------------- #
def _layernorm_kernel(x_ref, g_ref, bt_ref, o_ref, *, eps):
    x = x_ref[...].astype(jnp.float32)
    mu = jnp.mean(x, axis=-1, keepdims=True)
    var = jnp.mean((x - mu) ** 2, axis=-1, keepdims=True)
    xn = (x - mu) * lax.rsqrt(var + eps)
    o_ref[...] = (xn * g_ref[...].astype(jnp.float32)
                  + bt_ref[...].astype(jnp.float32)).astype(o_ref.dtype)


def layernorm(x, gamma, beta, *, eps=_LN_EPS, out_dtype=None):
    M, K = x.shape
    tm = min(_ROW_TILE, M)
    return pl.pallas_call(
        functools.partial(_layernorm_kernel, eps=eps),
        out_shape=jax.ShapeDtypeStruct((M, K), out_dtype or x.dtype),
        grid=(pl.cdiv(M, tm),),
        in_specs=[
            pl.BlockSpec((tm, K), lambda i: (i, 0)),
            pl.BlockSpec((1, K), lambda i: (0, 0)),
            pl.BlockSpec((1, K), lambda i: (0, 0)),
        ],
        out_specs=pl.BlockSpec((tm, K), lambda i: (i, 0)),
        compiler_params=_cparams(("parallel",)),
    )(x, gamma.reshape(1, -1), beta.reshape(1, -1))


# ------------------------------------------------------------- parameter setup
def init_params(key, *, in_chans, patch, img, dim, depth, heads, mlp_hidden,
                dtype=jnp.bfloat16):
    del heads  # head count is a config value, not a parameter shape
    n_patches = (img // patch) ** 2
    std = 0.02

    def nrm(k, shape):
        return (jax.random.normal(k, shape, jnp.float32) * std).astype(dtype)

    keys = list(jax.random.split(key, 3 + 4 * depth))
    nk = iter(keys).__next__

    pos = nrm(nk(), (n_patches + 1, dim))
    params = {
        # conv weight [D, C, P, P] flattened to [C*P*P, D] (matmul form)
        "patch_w": nrm(nk(), (in_chans * patch * patch, dim)),
        "patch_b": jnp.zeros((dim,), dtype),
        "cls": nrm(nk(), (1, dim)),
        "pos_cls": pos[0:1],
        "pos_patch": pos[1:],
        "ln_g": jnp.ones((dim,), jnp.float32),
        "ln_b": jnp.zeros((dim,), jnp.float32),
        "blocks": [],
    }
    for _ in range(depth):
        fc1_w = nrm(nk(), (dim, 2 * mlp_hidden))   # SwiGLUPacked fc1: [x1 | x2]
        blk = {
            "ln1_g": jnp.ones((dim,), jnp.float32),
            "ln1_b": jnp.zeros((dim,), jnp.float32),
            "qkv_w": nrm(nk(), (dim, 3 * dim)),
            "qkv_b": jnp.zeros((3 * dim,), dtype),
            "proj_w": nrm(nk(), (dim, dim)),
            "proj_b": jnp.zeros((dim,), dtype),
            "ln2_g": jnp.ones((dim,), jnp.float32),
            "ln2_b": jnp.zeros((dim,), jnp.float32),
            "fc1_w1": fc1_w[:, :mlp_hidden],
            "fc1_b1": jnp.zeros((mlp_hidden,), dtype),
            "fc1_w2": fc1_w[:, mlp_hidden:],
            "fc1_b2": jnp.zeros((mlp_hidden,), dtype),
            "fc2_w": nrm(nk(), (mlp_hidden, dim)),
            "fc2_b": jnp.zeros((dim,), dtype),
        }
        params["blocks"].append(blk)
    return params


# ------------------------------------------------------------------ forward
def virchow_forward(params, x, *, cfg, mode="full"):
    """x: [B, C, H, W] float32 (NCHW, like PyTorch)."""
    B, C, H, W = x.shape
    P = cfg["patch"]
    D = cfg["dim"]
    heads = cfg["heads"]
    dh = D // heads
    nH, nW = H // P, W // P
    Np = nH * nW
    N1 = Np + 1

    # conv(stride=P, kernel=P) == patch-flatten + matmul; pure layout glue on host.
    patches = x.reshape(B, C, nH, P, nW, P).transpose(0, 2, 4, 1, 3, 5)
    patches = patches.reshape(B, Np, C * P * P).astype(jnp.bfloat16)

    # patch embed + cls token + positional embedding, fused
    tokens = patch_embed(patches, params["patch_w"], params["patch_b"],
                         params["cls"], params["pos_cls"], params["pos_patch"])
    flat = tokens.reshape(B * N1, D)

    # transformer blocks (pre-LN, MHSA + SwiGLU-packed MLP with SiLU)
    for blk in params["blocks"]:
        qkv = ln_matmul(flat, blk["ln1_g"], blk["ln1_b"],
                        blk["qkv_w"], blk["qkv_b"])                   # [B*N1, 3D]
        a = attention(qkv.reshape(B, N1, 3 * D), heads=heads, dh=dh)  # [B, N1, D]
        flat = matmul_bias_residual(a.reshape(B * N1, D),
                                    blk["proj_w"], blk["proj_b"], flat)
        g = ln_swiglu(flat, blk["ln2_g"], blk["ln2_b"],
                      blk["fc1_w1"], blk["fc1_b1"],
                      blk["fc1_w2"], blk["fc1_b2"])                   # [B*N1, mh]
        flat = matmul_bias_residual(g, blk["fc2_w"], blk["fc2_b"], flat)

    if mode == "full":
        # concat([class_token, mean(patch_tokens)], -1) with the final LN fused in
        return ln_pool(flat.reshape(B, N1, D), params["ln_g"], params["ln_b"])

    out = layernorm(flat, params["ln_g"], params["ln_b"], out_dtype=jnp.float32)
    out = out.reshape(B, N1, D)
    if mode == "patch_tokens":
        return out[:, 1:]
    if mode == "class_token":
        return out[:, 0]
    raise ValueError(f"Unknown mode: {mode}")


def make_forward(cfg, mode):
    def fwd(params, x):
        return virchow_forward(params, x, cfg=cfg, mode=mode)
    return jax.jit(fwd)


# --------------------------------------------------------------------- main
if __name__ == "__main__":
    key = jax.random.PRNGKey(0)
    pkey, xkey = jax.random.split(key)

    # Small ViT consistent with Virchow's structure (patch conv, cls token,
    # pre-LN blocks, SwiGLU-packed MLP with SiLU, cls + mean-patch embedding).
    B, C, HW = 2, 3, 16
    PATCH, DIM, DEPTH, HEADS, MLP_HIDDEN = 4, 32, 2, 4, 64

    cfg = dict(patch=PATCH, dim=DIM, heads=HEADS, depth=DEPTH, mlp_hidden=MLP_HIDDEN)
    params = init_params(
        pkey, in_chans=C, patch=PATCH, img=HW,
        dim=DIM, depth=DEPTH, heads=HEADS, mlp_hidden=MLP_HIDDEN,
    )
    x = jax.random.normal(xkey, (B, C, HW, HW), jnp.float32)

    fwd_full = make_forward(cfg, "full")
    emb = jax.block_until_ready(fwd_full(params, x))
    assert emb.shape == (B, 2 * DIM), emb.shape
    assert bool(jnp.all(jnp.isfinite(emb))), "non-finite embedding"

    fwd_cls = make_forward(cfg, "class_token")
    cls_tok = jax.block_until_ready(fwd_cls(params, x))
    assert cls_tok.shape == (B, DIM), cls_tok.shape

    print("KERNEL_OK")
</pallas_src>

<mosaic_0001>
module attributes {stable_mosaic.version = 11 : i64} {
  func.func @_attention_kernel(%arg0: i32, %arg1: memref<1x17x96xbf16, #tpu.memory_space<vmem>>, %arg2: memref<1x17x32xbf16, #tpu.memory_space<vmem>>) attributes {dimension_semantics = [#tpu.dimension_semantics<parallel>], iteration_bounds = array<i64: 2>, scalar_prefetch = 0 : i64, scratch_operands = 0 : i64, tpu.core_type = #tpu.core_type<tc>, window_params = [{transform_indices = @transform_0, window_bounds = array<i64: 1, 17, 96>}, {transform_indices = @transform_1, window_bounds = array<i64: 1, 17, 32>}]} {
    %c0 = arith.constant 0 : index
    %c0_0 = arith.constant 0 : index
    %c0_1 = arith.constant 0 : index
    %0 = vector.load %arg1[%c0, %c0_0, %c0_1] : memref<1x17x96xbf16, #tpu.memory_space<vmem>>, vector<1x17x96xbf16>
    %1 = vector.shape_cast %0 : vector<1x17x96xbf16> to vector<17x96xbf16>
    %2 = vector.extract_strided_slice %1 {offsets = [0, 0], sizes = [17, 8], strides = [1, 1]} : vector<17x96xbf16> to vector<17x8xbf16>
    %cst = arith.constant 3.535160e-01 : bf16
    %3 = vector.broadcast %cst : bf16 to vector<17x8xbf16>
    %4 = arith.mulf %2, %3 : vector<17x8xbf16>
    %5 = vector.extract_strided_slice %1 {offsets = [0, 32], sizes = [17, 8], strides = [1, 1]} : vector<17x96xbf16> to vector<17x8xbf16>
    %6 = vector.extract_strided_slice %1 {offsets = [0, 64], sizes = [17, 8], strides = [1, 1]} : vector<17x96xbf16> to vector<17x8xbf16>
    %cst_2 = arith.constant dense<0.000000e+00> : vector<17x17xf32>
    %7 = tpu.matmul %4, %5, %cst_2 {dimension_numbers = #tpu.dot_dimension_numbers<[1], [1], [0], [0], [0, 0, 1, 0], [], []>} : vector<17x8xbf16>, vector<17x8xbf16>, vector<17x17xf32> -> vector<17x17xf32>
    %cst_3 = arith.constant dense<0xFF800000> : vector<17xf32>
    %8 = vector.multi_reduction <maximumf>, %7, %cst_3 [1] : vector<17x17xf32> to vector<17xf32>
    %9 = vector.shape_cast %8 : vector<17xf32> to vector<17x1xf32>
    %10 = vector.broadcast %9 : vector<17x1xf32> to vector<17x17xf32>
    %11 = arith.subf %7, %10 : vector<17x17xf32>
    %12 = math.exp %11 : vector<17x17xf32>
    %cst_4 = arith.constant dense<0.000000e+00> : vector<17xf32>
    %13 = vector.multi_reduction <add>, %12, %cst_4 [1] : vector<17x17xf32> to vector<17xf32>
    %14 = vector.shape_cast %13 : vector<17xf32> to vector<17x1xf32>
    %15 = tpu.reciprocal %14 {approx = true} : vector<17x1xf32> -> vector<17x1xf32>
    %16 = vector.broadcast %15 : vector<17x1xf32> to vector<17x17xf32>
    %17 = arith.mulf %12, %16 : vector<17x17xf32>
    %18 = arith.truncf %17 : vector<17x17xf32> to vector<17x17xbf16>
    %cst_5 = arith.constant dense<0.000000e+00> : vector<17x8xf32>
    %19 = tpu.matmul %18, %6, %cst_5 {dimension_numbers = #tpu.dot_dimension_numbers<[1], [0], [0], [1], [0, 0, 1, 1], [], []>} : vector<17x17xbf16>, vector<17x8xbf16>, vector<17x8xf32> -> vector<17x8xf32>
    %20 = arith.truncf %19 : vector<17x8xf32> to vector<17x8xbf16>
    %c0_6 = arith.constant 0 : index
    %c0_7 = arith.constant 0 : index
    %c0_8 = arith.constant 0 : index
    %21 = vector.load %arg2[%c0_6, %c0_7, %c0_8] : memref<1x17x32xbf16, #tpu.memory_space<vmem>>, vector<1x17x8xbf16>
    %22 = vector.shape_cast %21 : vector<1x17x8xbf16> to vector<17x8xbf16>
    %23 = vector.shape_cast %20 : vector<17x8xbf16> to vector<1x17x8xbf16>
    tpu.vector_store %arg2[%c0_6, %c0_7, %c0_8], %23 {strides = array<i32>} : memref<1x17x32xbf16, #tpu.memory_space<vmem>>, vector<1x17x8xbf16>,
    %24 = vector.extract_strided_slice %1 {offsets = [0, 8], sizes = [17, 8], strides = [1, 1]} : vector<17x96xbf16> to vector<17x8xbf16>
    %cst_9 = arith.constant 3.535160e-01 : bf16
    %25 = vector.broadcast %cst_9 : bf16 to vector<17x8xbf16>
    %26 = arith.mulf %24, %25 : vector<17x8xbf16>
    %27 = vector.extract_strided_slice %1 {offsets = [0, 40], sizes = [17, 8], strides = [1, 1]} : vector<17x96xbf16> to vector<17x8xbf16>
    %28 = vector.extract_strided_slice %1 {offsets = [0, 72], sizes = [17, 8], strides = [1, 1]} : vector<17x96xbf16> to vector<17x8xbf16>
    %cst_10 = arith.constant dense<0.000000e+00> : vector<17x17xf32>
    %29 = tpu.matmul %26, %27, %cst_10 {dimension_numbers = #tpu.dot_dimension_numbers<[1], [1], [0], [0], [0, 0, 1, 0], [], []>} : vector<17x8xbf16>, vector<17x8xbf16>, vector<17x17xf32> -> vector<17x17xf32>
    %cst_11 = arith.constant dense<0xFF800000> : vector<17xf32>
    %30 = vector.multi_reduction <maximumf>, %29, %cst_11 [1] : vector<17x17xf32> to vector<17xf32>
    %31 = vector.shape_cast %30 : vector<17xf32> to vector<17x1xf32>
    %32 = vector.broadcast %31 : vector<17x1xf32> to vector<17x17xf32>
    %33 = arith.subf %29, %32 : vector<17x17xf32>
    %34 = math.exp %33 : vector<17x17xf32>
    %cst_12 = arith.constant dense<0.000000e+00> : vector<17xf32>
    %35 = vector.multi_reduction <add>, %34, %cst_12 [1] : vector<17x17xf32> to vector<17xf32>
    %36 = vector.shape_cast %35 : vector<17xf32> to vector<17x1xf32>
    %37 = tpu.reciprocal %36 {approx = true} : vector<17x1xf32> -> vector<17x1xf32>
    %38 = vector.broadcast %37 : vector<17x1xf32> to vector<17x17xf32>
    %39 = arith.mulf %34, %38 : vector<17x17xf32>
    %40 = arith.truncf %39 : vector<17x17xf32> to vector<17x17xbf16>
    %cst_13 = arith.constant dense<0.000000e+00> : vector<17x8xf32>
    %41 = tpu.matmul %40, %28, %cst_13 {dimension_numbers = #tpu.dot_dimension_numbers<[1], [0], [0], [1], [0, 0, 1, 1], [], []>} : vector<17x17xbf16>, vector<17x8xbf16>, vector<17x8xf32> -> vector<17x8xf32>
    %42 = arith.truncf %41 : vector<17x8xf32> to vector<17x8xbf16>
    %c0_14 = arith.constant 0 : index
    %c0_15 = arith.constant 0 : index
    %c8 = arith.constant 8 : index
    %43 = vector.load %arg2[%c0_14, %c0_15, %c8] : memref<1x17x32xbf16, #tpu.memory_space<vmem>>, vector<1x17x8xbf16>
    %44 = vector.shape_cast %43 : vector<1x17x8xbf16> to vector<17x8xbf16>
    %45 = vector.shape_cast %42 : vector<17x8xbf16> to vector<1x17x8xbf16>
    tpu.vector_store %arg2[%c0_14, %c0_15, %c8], %45 {strides = array<i32>} : memref<1x17x32xbf16, #tpu.memory_space<vmem>>, vector<1x17x8xbf16>,
    %46 = vector.extract_strided_slice %1 {offsets = [0, 16], sizes = [17, 8], strides = [1, 1]} : vector<17x96xbf16> to vector<17x8xbf16>
    %cst_16 = arith.constant 3.535160e-01 : bf16
    %47 = vector.broadcast %cst_16 : bf16 to vector<17x8xbf16>
    %48 = arith.mulf %46, %47 : vector<17x8xbf16>
    %49 = vector.extract_strided_slice %1 {offsets = [0, 48], sizes = [17, 8], strides = [1, 1]} : vector<17x96xbf16> to vector<17x8xbf16>
    %50 = vector.extract_strided_slice %1 {offsets = [0, 80], sizes = [17, 8], strides = [1, 1]} : vector<17x96xbf16> to vector<17x8xbf16>
    %cst_17 = arith.constant dense<0.000000e+00> : vector<17x17xf32>
    %51 = tpu.matmul %48, %49, %cst_17 {dimension_numbers = #tpu.dot_dimension_numbers<[1], [1], [0], [0], [0, 0, 1, 0], [], []>} : vector<17x8xbf16>, vector<17x8xbf16>, vector<17x17xf32> -> vector<17x17xf32>
    %cst_18 = arith.constant dense<0xFF800000> : vector<17xf32>
    %52 = vector.multi_reduction <maximumf>, %51, %cst_18 [1] : vector<17x17xf32> to vector<17xf32>
    %53 = vector.shape_cast %52 : vector<17xf32> to vector<17x1xf32>
    %54 = vector.broadcast %53 : vector<17x1xf32> to vector<17x17xf32>
    %55 = arith.subf %51, %54 : vector<17x17xf32>
    %56 = math.exp %55 : vector<17x17xf32>
    %cst_19 = arith.constant dense<0.000000e+00> : vector<17xf32>
    %57 = vector.multi_reduction <add>, %56, %cst_19 [1] : vector<17x17xf32> to vector<17xf32>
    %58 = vector.shape_cast %57 : vector<17xf32> to vector<17x1xf32>
    %59 = tpu.reciprocal %58 {approx = true} : vector<17x1xf32> -> vector<17x1xf32>
    %60 = vector.broadcast %59 : vector<17x1xf32> to vector<17x17xf32>
    %61 = arith.mulf %56, %60 : vector<17x17xf32>
    %62 = arith.truncf %61 : vector<17x17xf32> to vector<17x17xbf16>
    %cst_20 = arith.constant dense<0.000000e+00> : vector<17x8xf32>
    %63 = tpu.matmul %62, %50, %cst_20 {dimension_numbers = #tpu.dot_dimension_numbers<[1], [0], [0], [1], [0, 0, 1, 1], [], []>} : vector<17x17xbf16>, vector<17x8xbf16>, vector<17x8xf32> -> vector<17x8xf32>
    %64 = arith.truncf %63 : vector<17x8xf32> to vector<17x8xbf16>
    %c0_21 = arith.constant 0 : index
    %c0_22 = arith.constant 0 : index
    %c16 = arith.constant 16 : index
    %65 = vector.load %arg2[%c0_21, %c0_22, %c16] : memref<1x17x32xbf16, #tpu.memory_space<vmem>>, vector<1x17x8xbf16>
    %66 = vector.shape_cast %65 : vector<1x17x8xbf16> to vector<17x8xbf16>
    %67 = vector.shape_cast %64 : vector<17x8xbf16> to vector<1x17x8xbf16>
    tpu.vector_store %arg2[%c0_21, %c0_22, %c16], %67 {strides = array<i32>} : memref<1x17x32xbf16, #tpu.memory_space<vmem>>, vector<1x17x8xbf16>,
    %68 = vector.extract_strided_slice %1 {offsets = [0, 24], sizes = [17, 8], strides = [1, 1]} : vector<17x96xbf16> to vector<17x8xbf16>
    %cst_23 = arith.constant 3.535160e-01 : bf16
    %69 = vector.broadcast %cst_23 : bf16 to vector<17x8xbf16>
    %70 = arith.mulf %68, %69 : vector<17x8xbf16>
    %71 = vector.extract_strided_slice %1 {offsets = [0, 56], sizes = [17, 8], strides = [1, 1]} : vector<17x96xbf16> to vector<17x8xbf16>
    %72 = vector.extract_strided_slice %1 {offsets = [0, 88], sizes = [17, 8], strides = [1, 1]} : vector<17x96xbf16> to vector<17x8xbf16>
    %cst_24 = arith.constant dense<0.000000e+00> : vector<17x17xf32>
    %73 = tpu.matmul %70, %71, %cst_24 {dimension_numbers = #tpu.dot_dimension_numbers<[1], [1], [0], [0], [0, 0, 1, 0], [], []>} : vector<17x8xbf16>, vector<17x8xbf16>, vector<17x17xf32> -> vector<17x17xf32>
    %cst_25 = arith.constant dense<0xFF800000> : vector<17xf32>
    %74 = vector.multi_reduction <maximumf>, %73, %cst_25 [1] : vector<17x17xf32> to vector<17xf32>
    %75 = vector.shape_cast %74 : vector<17xf32> to vector<17x1xf32>
    %76 = vector.broadcast %75 : vector<17x1xf32> to vector<17x17xf32>
    %77 = arith.subf %73, %76 : vector<17x17xf32>
    %78 = math.exp %77 : vector<17x17xf32>
    %cst_26 = arith.constant dense<0.000000e+00> : vector<17xf32>
    %79 = vector.multi_reduction <add>, %78, %cst_26 [1] : vector<17x17xf32> to vector<17xf32>
    %80 = vector.shape_cast %79 : vector<17xf32> to vector<17x1xf32>
    %81 = tpu.reciprocal %80 {approx = true} : vector<17x1xf32> -> vector<17x1xf32>
    %82 = vector.broadcast %81 : vector<17x1xf32> to vector<17x17xf32>
    %83 = arith.mulf %78, %82 : vector<17x17xf32>
    %84 = arith.truncf %83 : vector<17x17xf32> to vector<17x17xbf16>
    %cst_27 = arith.constant dense<0.000000e+00> : vector<17x8xf32>
    %85 = tpu.matmul %84, %72, %cst_27 {dimension_numbers = #tpu.dot_dimension_numbers<[1], [0], [0], [1], [0, 0, 1, 1], [], []>} : vector<17x17xbf16>, vector<17x8xbf16>, vector<17x8xf32> -> vector<17x8xf32>
    %86 = arith.truncf %85 : vector<17x8xf32> to vector<17x8xbf16>
    %c0_28 = arith.constant 0 : index
    %c0_29 = arith.constant 0 : index
    %c24 = arith.constant 24 : index
    %87 = vector.load %arg2[%c0_28, %c0_29, %c24] : memref<1x17x32xbf16, #tpu.memory_space<vmem>>, vector<1x17x8xbf16>
    %88 = vector.shape_cast %87 : vector<1x17x8xbf16> to vector<17x8xbf16>
    %89 = vector.shape_cast %86 : vector<17x8xbf16> to vector<1x17x8xbf16>
    tpu.vector_store %arg2[%c0_28, %c0_29, %c24], %89 {strides = array<i32>} : memref<1x17x32xbf16, #tpu.memory_space<vmem>>, vector<1x17x8xbf16>,
    return
  }
  func.func @transform_0(%arg0: i32) -> (i32, i32, i32) {
    %c0_i32 = arith.constant 0 : i32
    %c0_i32_0 = arith.constant 0 : i32
    %c0_i32_1 = arith.constant 0 : i32
    return %arg0, %c0_i32, %c0_i32_0 : i32, i32, i32
  }
  func.func @transform_1(%arg0: i32) -> (i32, i32, i32) {
    %c0_i32 = arith.constant 0 : i32
    %c0_i32_0 = arith.constant 0 : i32
    %c0_i32_1 = arith.constant 0 : i32
    return %arg0, %c0_i32, %c0_i32_0 : i32, i32, i32
  }
}

module attributes {stable_mosaic.version = 11 : i64} {
  func.func @_patch_embed_kernel(%arg0: i32, %arg1: memref<1x16x48xbf16, #tpu.memory_space<vmem>>, %arg2: memref<48x32xbf16, #tpu.memory_space<vmem>>, %arg3: memref<1x32xbf16, #tpu.memory_space<vmem>>, %arg4: memref<1x32xbf16, #tpu.memory_space<vmem>>, %arg5: memref<1x32xbf16, #tpu.memory_space<vmem>>, %arg6: memref<16x32xbf16, #tpu.memory_space<vmem>>, %arg7: memref<1x17x32xbf16, #tpu.memory_space<vmem>>) attributes {dimension_semantics = [#tpu.dimension_semantics<parallel>], iteration_bounds = array<i64: 2>, scalar_prefetch = 0 : i64, scratch_operands = 0 : i64, tpu.core_type = #tpu.core_type<tc>, window_params = [{transform_indices = @transform_0, window_bounds = array<i64: 1, 16, 48>}, {pipeline_mode = #tpu.pipeline_mode<synchronous>, transform_indices = @transform_1, window_bounds = array<i64: 48, 32>}, {pipeline_mode = #tpu.pipeline_mode<synchronous>, transform_indices = @transform_2, window_bounds = array<i64: 1, 32>}, {pipeline_mode = #tpu.pipeline_mode<synchronous>, transform_indices = @transform_3, window_bounds = array<i64: 1, 32>}, {pipeline_mode = #tpu.pipeline_mode<synchronous>, transform_indices = @transform_4, window_bounds = array<i64: 1, 32>}, {pipeline_mode = #tpu.pipeline_mode<synchronous>, transform_indices = @transform_5, window_bounds = array<i64: 16, 32>}, {transform_indices = @transform_6, window_bounds = array<i64: 1, 17, 32>}]} {
    %c0 = arith.constant 0 : index
    %c0_0 = arith.constant 0 : index
    %c0_1 = arith.constant 0 : index
    %0 = vector.load %arg1[%c0, %c0_0, %c0_1] : memref<1x16x48xbf16, #tpu.memory_space<vmem>>, vector<1x16x48xbf16>
    %1 = vector.shape_cast %0 : vector<1x16x48xbf16> to vector<16x48xbf16>
    %c0_2 = arith.constant 0 : index
    %c0_3 = arith.constant 0 : index
    %2 = vector.load %arg2[%c0_2, %c0_3] : memref<48x32xbf16, #tpu.memory_space<vmem>>, vector<48x32xbf16>
    %cst = arith.constant dense<0.000000e+00> : vector<16x32xf32>
    %3 = tpu.matmul %1, %2, %cst {dimension_numbers = #tpu.dot_dimension_numbers<[1], [0], [0], [1], [0, 0, 1, 1], [], []>} : vector<16x48xbf16>, vector<48x32xbf16>, vector<16x32xf32> -> vector<16x32xf32>
    %c0_4 = arith.constant 0 : index
    %c0_5 = arith.constant 0 : index
    %4 = vector.load %arg3[%c0_4, %c0_5] : memref<1x32xbf16, #tpu.memory_space<vmem>>, vector<1x32xbf16>
    %5 = arith.extf %4 : vector<1x32xbf16> to vector<1x32xf32>
    %6 = vector.broadcast %5 : vector<1x32xf32> to vector<16x32xf32>
    %7 = arith.addf %3, %6 : vector<16x32xf32>
    %c0_6 = arith.constant 0 : index
    %c0_7 = arith.constant 0 : index
    %8 = vector.load %arg6[%c0_6, %c0_7] : memref<16x32xbf16, #tpu.memory_space<vmem>>, vector<16x32xbf16>
    %9 = arith.extf %8 : vector<16x32xbf16> to vector<16x32xf32>
    %10 = arith.addf %7, %9 : vector<16x32xf32>
    %c0_8 = arith.constant 0 : index
    %c0_9 = arith.constant 0 : index
    %11 = vector.load %arg4[%c0_8, %c0_9] : memref<1x32xbf16, #tpu.memory_space<vmem>>, vector<1x32xbf16>
    %12 = arith.extf %11 : vector<1x32xbf16> to vector<1x32xf32>
    %c0_10 = arith.constant 0 : index
    %c0_11 = arith.constant 0 : index
    %13 = vector.load %arg5[%c0_10, %c0_11] : memref<1x32xbf16, #tpu.memory_space<vmem>>, vector<1x32xbf16>
    %14 = arith.extf %13 : vector<1x32xbf16> to vector<1x32xf32>
    %15 = arith.addf %12, %14 : vector<1x32xf32>
    %16 = arith.truncf %15 : vector<1x32xf32> to vector<1x32xbf16>
    %c0_12 = arith.constant 0 : index
    %c0_13 = arith.constant 0 : index
    %c0_14 = arith.constant 0 : index
    %17 = vector.load %arg7[%c0_12, %c0_13, %c0_14] : memref<1x17x32xbf16, #tpu.memory_space<vmem>>, vector<1x1x32xbf16>
    %18 = vector.shape_cast %17 : vector<1x1x32xbf16> to vector<1x32xbf16>
    %19 = vector.shape_cast %16 : vector<1x32xbf16> to vector<1x1x32xbf16>
    tpu.vector_store %arg7[%c0_12, %c0_13, %c0_14], %19 {strides = array<i32>} : memref<1x17x32xbf16, #tpu.memory_space<vmem>>, vector<1x1x32xbf16>,
    %20 = arith.truncf %10 : vector<16x32xf32> to vector<16x32xbf16>
    %c0_15 = arith.constant 0 : index
    %c1 = arith.constant 1 : index
    %c0_16 = arith.constant 0 : index
    %21 = vector.load %arg7[%c0_15, %c1, %c0_16] : memref<1x17x32xbf16, #tpu.memory_space<vmem>>, vector<1x16x32xbf16>
    %22 = vector.shape_cast %21 : vector<1x16x32xbf16> to vector<16x32xbf16>
    %23 = vector.shape_cast %20 : vector<16x32xbf16> to vector<1x16x32xbf16>
    tpu.vector_store %arg7[%c0_15, %c1, %c0_16], %23 {strides = array<i32>} : memref<1x17x32xbf16, #tpu.memory_space<vmem>>, vector<1x16x32xbf16>,
    return
  }
  func.func @transform_0(%arg0: i32) -> (i32, i32, i32) {
    %c0_i32 = arith.constant 0 : i32
    %c0_i32_0 = arith.constant 0 : i32
    %c0_i32_1 = arith.constant 0 : i32
    return %arg0, %c0_i32, %c0_i32_0 : i32, i32, i32
  }
  func.func @transform_1(%arg0: i32) -> (i32, i32) {
    %c0_i32 = arith.constant 0 : i32
    %c0_i32_0 = arith.constant 0 : i32
    %c0_i32_1 = arith.constant 0 : i32
    return %c0_i32, %c0_i32_0 : i32, i32
  }
  func.func @transform_2(%arg0: i32) -> (i32, i32) {
    %c0_i32 = arith.constant 0 : i32
    %c0_i32_0 = arith.constant 0 : i32
    %c0_i32_1 = arith.constant 0 : i32
    return %c0_i32, %c0_i32_0 : i32, i32
  }
  func.func @transform_3(%arg0: i32) -> (i32, i32) {
    %c0_i32 = arith.constant 0 : i32
    %c0_i32_0 = arith.constant 0 : i32
    %c0_i32_1 = arith.constant 0 : i32
    return %c0_i32, %c0_i32_0 : i32, i32
  }
  func.func @transform_4(%arg0: i32) -> (i32, i32) {
    %c0_i32 = arith.constant 0 : i32
    %c0_i32_0 = arith.constant 0 : i32
    %c0_i32_1 = arith.constant 0 : i32
    return %c0_i32, %c0_i32_0 : i32, i32
  }
  func.func @transform_5(%arg0: i32) -> (i32, i32) {
    %c0_i32 = arith.constant 0 : i32
    %c0_i32_0 = arith.constant 0 : i32
    %c0_i32_1 = arith.constant 0 : i32
    return %c0_i32, %c0_i32_0 : i32, i32
  }
  func.func @transform_6(%arg0: i32) -> (i32, i32, i32) {
    %c0_i32 = arith.constant 0 : i32
    %c0_i32_0 = arith.constant 0 : i32
    %c0_i32_1 = arith.constant 0 : i32
    return %arg0, %c0_i32, %c0_i32_0 : i32, i32, i32
  }
}

module attributes {stable_mosaic.version = 11 : i64} {
  func.func @_ln_matmul_kernel(%arg0: i32, %arg1: i32, %arg2: memref<34x32xbf16, #tpu.memory_space<vmem>>, %arg3: memref<1x32xf32, #tpu.memory_space<vmem>>, %arg4: memref<1x32xf32, #tpu.memory_space<vmem>>, %arg5: memref<32x96xbf16, #tpu.memory_space<vmem>>, %arg6: memref<1x96xbf16, #tpu.memory_space<vmem>>, %arg7: memref<34x96xbf16, #tpu.memory_space<vmem>>, %arg8: memref<34x32xbf16, #tpu.memory_space<vmem>>) attributes {dimension_semantics = [#tpu.dimension_semantics<parallel>, #tpu.dimension_semantics<arbitrary>], iteration_bounds = array<i64: 1, 1>, scalar_prefetch = 0 : i64, scratch_operands = 1 : i64, tpu.core_type = #tpu.core_type<tc>, window_params = [{transform_indices = @transform_0, window_bounds = array<i64: 34, 32>}, {pipeline_mode = #tpu.pipeline_mode<synchronous>, transform_indices = @transform_1, window_bounds = array<i64: 1, 32>}, {pipeline_mode = #tpu.pipeline_mode<synchronous>, transform_indices = @transform_2, window_bounds = array<i64: 1, 32>}, {transform_indices = @transform_3, window_bounds = array<i64: 32, 96>}, {transform_indices = @transform_4, window_bounds = array<i64: 1, 96>}, {transform_indices = @transform_5, window_bounds = array<i64: 34, 96>}]} {
    %c0_i32 = arith.constant 0 : i32
    %0 = arith.cmpi eq, %arg1, %c0_i32 : i32
    %1 = arith.extui %0 : i1 to i32
    %c0_i32_0 = arith.constant 0 : i32
    %2 = arith.cmpi ne, %1, %c0_i32_0 : i32
    scf.if %2 {
      %c0_8 = arith.constant 0 : index
      %c0_9 = arith.constant 0 : index
      %12 = vector.load %arg2[%c0_8, %c0_9] : memref<34x32xbf16, #tpu.memory_space<vmem>>, vector<34x32xbf16>
      %13 = arith.extf %12 : vector<34x32xbf16> to vector<34x32xf32>
      %cst_10 = arith.constant dense<0.000000e+00> : vector<34xf32>
      %14 = vector.multi_reduction <add>, %13, %cst_10 [1] : vector<34x32xf32> to vector<34xf32>
      %15 = vector.shape_cast %14 : vector<34xf32> to vector<34x1xf32>
      %cst_11 = arith.constant 3.200000e+01 : f32
      %16 = vector.broadcast %cst_11 : f32 to vector<34x1xf32>
      %17 = arith.divf %15, %16 : vector<34x1xf32>
      %18 = vector.broadcast %17 : vector<34x1xf32> to vector<34x32xf32>
      %19 = arith.subf %13, %18 : vector<34x32xf32>
      %20 = arith.mulf %19, %19 : vector<34x32xf32>
      %cst_12 = arith.constant dense<0.000000e+00> : vector<34xf32>
      %21 = vector.multi_reduction <add>, %20, %cst_12 [1] : vector<34x32xf32> to vector<34xf32>
      %22 = vector.shape_cast %21 : vector<34xf32> to vector<34x1xf32>
      %cst_13 = arith.constant 3.200000e+01 : f32
      %23 = vector.broadcast %cst_13 : f32 to vector<34x1xf32>
      %24 = arith.divf %22, %23 : vector<34x1xf32>
      %25 = vector.broadcast %17 : vector<34x1xf32> to vector<34x32xf32>
      %26 = arith.subf %13, %25 : vector<34x32xf32>
      %cst_14 = arith.constant 9.99999997E-7 : f32
      %27 = vector.broadcast %cst_14 : f32 to vector<34x1xf32>
      %28 = arith.addf %24, %27 : vector<34x1xf32>
      %29 = math.rsqrt %28 : vector<34x1xf32>
      %30 = vector.broadcast %29 : vector<34x1xf32> to vector<34x32xf32>
      %31 = arith.mulf %26, %30 : vector<34x32xf32>
      %c0_15 = arith.constant 0 : index
      %c0_16 = arith.constant 0 : index
      %32 = vector.load %arg3[%c0_15, %c0_16] : memref<1x32xf32, #tpu.memory_space<vmem>>, vector<1x32xf32>
      %33 = vector.broadcast %32 : vector<1x32xf32> to vector<34x32xf32>
      %34 = arith.mulf %31, %33 : vector<34x32xf32>
      %c0_17 = arith.constant 0 : index
      %c0_18 = arith.constant 0 : index
      %35 = vector.load %arg4[%c0_17, %c0_18] : memref<1x32xf32, #tpu.memory_space<vmem>>, vector<1x32xf32>
      %36 = vector.broadcast %35 : vector<1x32xf32> to vector<34x32xf32>
      %37 = arith.addf %34, %36 : vector<34x32xf32>
      %38 = arith.truncf %37 : vector<34x32xf32> to vector<34x32xbf16>
      %c0_19 = arith.constant 0 : index
      %c0_20 = arith.constant 0 : index
      %39 = vector.load %arg8[%c0_19, %c0_20] : memref<34x32xbf16, #tpu.memory_space<vmem>>, vector<34x32xbf16>
      tpu.vector_store %arg8[%c0_19, %c0_20], %38 {strides = array<i32>} : memref<34x32xbf16, #tpu.memory_space<vmem>>, vector<34x32xbf16>,
    } else {
    }
    %c0 = arith.constant 0 : index
    %c0_1 = arith.constant 0 : index
    %3 = vector.load %arg8[%c0, %c0_1] : memref<34x32xbf16, #tpu.memory_space<vmem>>, vector<34x32xbf16>
    %c0_2 = arith.constant 0 : index
    %c0_3 = arith.constant 0 : index
    %4 = vector.load %arg5[%c0_2, %c0_3] : memref<32x96xbf16, #tpu.memory_space<vmem>>, vector<32x96xbf16>
    %cst = arith.constant dense<0.000000e+00> : vector<34x96xf32>
    %5 = tpu.matmul %3, %4, %cst {dimension_numbers = #tpu.dot_dimension_numbers<[1], [0], [0], [1], [0, 0, 1, 1], [], []>} : vector<34x32xbf16>, vector<32x96xbf16>, vector<34x96xf32> -> vector<34x96xf32>
    %c0_4 = arith.constant 0 : index
    %c0_5 = arith.constant 0 : index
    %6 = vector.load %arg6[%c0_4, %c0_5] : memref<1x96xbf16, #tpu.memory_space<vmem>>, vector<1x96xbf16>
    %7 = arith.extf %6 : vector<1x96xbf16> to vector<1x96xf32>
    %8 = vector.broadcast %7 : vector<1x96xf32> to vector<34x96xf32>
    %9 = arith.addf %5, %8 : vector<34x96xf32>
    %10 = arith.truncf %9 : vector<34x96xf32> to vector<34x96xbf16>
    %c0_6 = arith.constant 0 : index
    %c0_7 = arith.constant 0 : index
    %11 = vector.load %arg7[%c0_6, %c0_7] : memref<34x96xbf16, #tpu.memory_space<vmem>>, vector<34x96xbf16>
    tpu.vector_store %arg7[%c0_6, %c0_7], %10 {strides = array<i32>} : memref<34x96xbf16, #tpu.memory_space<vmem>>, vector<34x96xbf16>,
    return
  }
  func.func @transform_0(%arg0: i32, %arg1: i32) -> (i32, i32) {
    %c0_i32 = arith.constant 0 : i32
    %c0_i32_0 = arith.constant 0 : i32
    return %arg0, %c0_i32 : i32, i32
  }
  func.func @transform_1(%arg0: i32, %arg1: i32) -> (i32, i32) {
    %c0_i32 = arith.constant 0 : i32
    %c0_i32_0 = arith.constant 0 : i32
    %c0_i32_1 = arith.constant 0 : i32
    return %c0_i32, %c0_i32_0 : i32, i32
  }
  func.func @transform_2(%arg0: i32, %arg1: i32) -> (i32, i32) {
    %c0_i32 = arith.constant 0 : i32
    %c0_i32_0 = arith.constant 0 : i32
    %c0_i32_1 = arith.constant 0 : i32
    return %c0_i32, %c0_i32_0 : i32, i32
  }
  func.func @transform_3(%arg0: i32, %arg1: i32) -> (i32, i32) {
    %c0_i32 = arith.constant 0 : i32
    %c0_i32_0 = arith.constant 0 : i32
    return %c0_i32, %arg1 : i32, i32
  }
  func.func @transform_4(%arg0: i32, %arg1: i32) -> (i32, i32) {
    %c0_i32 = arith.constant 0 : i32
    %c0_i32_0 = arith.constant 0 : i32
    return %c0_i32, %arg1 : i32, i32
  }
  func.func @transform_5(%arg0: i32, %arg1: i32) -> (i32, i32) {
    %c0_i32 = arith.constant 0 : i32
    return %arg0, %arg1 : i32, i32
  }
}

module attributes {stable_mosaic.version = 11 : i64} {
  func.func @_matmul_bias_res_kernel(%arg0: i32, %arg1: i32, %arg2: memref<34x32xbf16, #tpu.memory_space<vmem>>, %arg3: memref<32x32xbf16, #tpu.memory_space<vmem>>, %arg4: memref<1x32xbf16, #tpu.memory_space<vmem>>, %arg5: memref<34x32xbf16, #tpu.memory_space<vmem>>, %arg6: memref<34x32xbf16, #tpu.memory_space<vmem>>) attributes {dimension_semantics = [#tpu.dimension_semantics<parallel>, #tpu.dimension_semantics<parallel>], iteration_bounds = array<i64: 1, 1>, scalar_prefetch = 0 : i64, scratch_operands = 0 : i64, tpu.core_type = #tpu.core_type<tc>, window_params = [{transform_indices = @transform_0, window_bounds = array<i64: 34, 32>}, {transform_indices = @transform_1, window_bounds = array<i64: 32, 32>}, {transform_indices = @transform_2, window_bounds = array<i64: 1, 32>}, {transform_indices = @transform_3, window_bounds = array<i64: 34, 32>}, {transform_indices = @transform_4, window_bounds = array<i64: 34, 32>}]} {
    %c0 = arith.constant 0 : index
    %c0_0 = arith.constant 0 : index
    %0 = vector.load %arg2[%c0, %c0_0] : memref<34x32xbf16, #tpu.memory_space<vmem>>, vector<34x32xbf16>
    %c0_1 = arith.constant 0 : index
    %c0_2 = arith.constant 0 : index
    %1 = vector.load %arg3[%c0_1, %c0_2] : memref<32x32xbf16, #tpu.memory_space<vmem>>, vector<32x32xbf16>
    %cst = arith.constant dense<0.000000e+00> : vector<34x32xf32>
    %2 = tpu.matmul %0, %1, %cst {dimension_numbers = #tpu.dot_dimension_numbers<[1], [0], [0], [1], [0, 0, 1, 1], [], []>} : vector<34x32xbf16>, vector<32x32xbf16>, vector<34x32xf32> -> vector<34x32xf32>
    %c0_3 = arith.constant 0 : index
    %c0_4 = arith.constant 0 : index
    %3 = vector.load %arg5[%c0_3, %c0_4] : memref<34x32xbf16, #tpu.memory_space<vmem>>, vector<34x32xbf16>
    %4 = arith.extf %3 : vector<34x32xbf16> to vector<34x32xf32>
    %5 = arith.addf %4, %2 : vector<34x32xf32>
    %c0_5 = arith.constant 0 : index
    %c0_6 = arith.constant 0 : index
    %6 = vector.load %arg4[%c0_5, %c0_6] : memref<1x32xbf16, #tpu.memory_space<vmem>>, vector<1x32xbf16>
    %7 = arith.extf %6 : vector<1x32xbf16> to vector<1x32xf32>
    %8 = vector.broadcast %7 : vector<1x32xf32> to vector<34x32xf32>
    %9 = arith.addf %5, %8 : vector<34x32xf32>
    %10 = arith.truncf %9 : vector<34x32xf32> to vector<34x32xbf16>
    %c0_7 = arith.constant 0 : index
    %c0_8 = arith.constant 0 : index
    %11 = vector.load %arg6[%c0_7, %c0_8] : memref<34x32xbf16, #tpu.memory_space<vmem>>, vector<34x32xbf16>
    tpu.vector_store %arg6[%c0_7, %c0_8], %10 {strides = array<i32>} : memref<34x32xbf16, #tpu.memory_space<vmem>>, vector<34x32xbf16>,
    return
  }
  func.func @transform_0(%arg0: i32, %arg1: i32) -> (i32, i32) {
    %c0_i32 = arith.constant 0 : i32
    %c0_i32_0 = arith.constant 0 : i32
    return %arg0, %c0_i32 : i32, i32
  }
  func.func @transform_1(%arg0: i32, %arg1: i32) -> (i32, i32) {
    %c0_i32 = arith.constant 0 : i32
    %c0_i32_0 = arith.constant 0 : i32
    return %c0_i32, %arg1 : i32, i32
  }
  func.func @transform_2(%arg0: i32, %arg1: i32) -> (i32, i32) {
    %c0_i32 = arith.constant 0 : i32
    %c0_i32_0 = arith.constant 0 : i32
    return %c0_i32, %arg1 : i32, i32
  }
  func.func @transform_3(%arg0: i32, %arg1: i32) -> (i32, i32) {
    %c0_i32 = arith.constant 0 : i32
    return %arg0, %arg1 : i32, i32
  }
  func.func @transform_4(%arg0: i32, %arg1: i32) -> (i32, i32) {
    %c0_i32 = arith.constant 0 : i32
    return %arg0, %arg1 : i32, i32
  }
}

module attributes {stable_mosaic.version = 11 : i64} {
  func.func @_ln_swiglu_kernel(%arg0: i32, %arg1: i32, %arg2: memref<34x32xbf16, #tpu.memory_space<vmem>>, %arg3: memref<1x32xf32, #tpu.memory_space<vmem>>, %arg4: memref<1x32xf32, #tpu.memory_space<vmem>>, %arg5: memref<32x64xbf16, #tpu.memory_space<vmem>>, %arg6: memref<1x64xbf16, #tpu.memory_space<vmem>>, %arg7: memref<32x64xbf16, #tpu.memory_space<vmem>>, %arg8: memref<1x64xbf16, #tpu.memory_space<vmem>>, %arg9: memref<34x64xbf16, #tpu.memory_space<vmem>>, %arg10: memref<34x32xbf16, #tpu.memory_space<vmem>>) attributes {dimension_semantics = [#tpu.dimension_semantics<parallel>, #tpu.dimension_semantics<arbitrary>], iteration_bounds = array<i64: 1, 1>, scalar_prefetch = 0 : i64, scratch_operands = 1 : i64, tpu.core_type = #tpu.core_type<tc>, window_params = [{transform_indices = @transform_0, window_bounds = array<i64: 34, 32>}, {pipeline_mode = #tpu.pipeline_mode<synchronous>, transform_indices = @transform_1, window_bounds = array<i64: 1, 32>}, {pipeline_mode = #tpu.pipeline_mode<synchronous>, transform_indices = @transform_2, window_bounds = array<i64: 1, 32>}, {transform_indices = @transform_3, window_bounds = array<i64: 32, 64>}, {transform_indices = @transform_4, window_bounds = array<i64: 1, 64>}, {transform_indices = @transform_5, window_bounds = array<i64: 32, 64>}, {transform_indices = @transform_6, window_bounds = array<i64: 1, 64>}, {transform_indices = @transform_7, window_bounds = array<i64: 34, 64>}]} {
    %c0_i32 = arith.constant 0 : i32
    %0 = arith.cmpi eq, %arg1, %c0_i32 : i32
    %1 = arith.extui %0 : i1 to i32
    %c0_i32_0 = arith.constant 0 : i32
    %2 = arith.cmpi ne, %1, %c0_i32_0 : i32
    scf.if %2 {
      %c0_14 = arith.constant 0 : index
      %c0_15 = arith.constant 0 : index
      %25 = vector.load %arg2[%c0_14, %c0_15] : memref<34x32xbf16, #tpu.memory_space<vmem>>, vector<34x32xbf16>
      %26 = arith.extf %25 : vector<34x32xbf16> to vector<34x32xf32>
      %cst_16 = arith.constant dense<0.000000e+00> : vector<34xf32>
      %27 = vector.multi_reduction <add>, %26, %cst_16 [1] : vector<34x32xf32> to vector<34xf32>
      %28 = vector.shape_cast %27 : vector<34xf32> to vector<34x1xf32>
      %cst_17 = arith.constant 3.200000e+01 : f32
      %29 = vector.broadcast %cst_17 : f32 to vector<34x1xf32>
      %30 = arith.divf %28, %29 : vector<34x1xf32>
      %31 = vector.broadcast %30 : vector<34x1xf32> to vector<34x32xf32>
      %32 = arith.subf %26, %31 : vector<34x32xf32>
      %33 = arith.mulf %32, %32 : vector<34x32xf32>
      %cst_18 = arith.constant dense<0.000000e+00> : vector<34xf32>
      %34 = vector.multi_reduction <add>, %33, %cst_18 [1] : vector<34x32xf32> to vector<34xf32>
      %35 = vector.shape_cast %34 : vector<34xf32> to vector<34x1xf32>
      %cst_19 = arith.constant 3.200000e+01 : f32
      %36 = vector.broadcast %cst_19 : f32 to vector<34x1xf32>
      %37 = arith.divf %35, %36 : vector<34x1xf32>
      %38 = vector.broadcast %30 : vector<34x1xf32> to vector<34x32xf32>
      %39 = arith.subf %26, %38 : vector<34x32xf32>
      %cst_20 = arith.constant 9.99999997E-7 : f32
      %40 = vector.broadcast %cst_20 : f32 to vector<34x1xf32>
      %41 = arith.addf %37, %40 : vector<34x1xf32>
      %42 = math.rsqrt %41 : vector<34x1xf32>
      %43 = vector.broadcast %42 : vector<34x1xf32> to vector<34x32xf32>
      %44 = arith.mulf %39, %43 : vector<34x32xf32>
      %c0_21 = arith.constant 0 : index
      %c0_22 = arith.constant 0 : index
      %45 = vector.load %arg3[%c0_21, %c0_22] : memref<1x32xf32, #tpu.memory_space<vmem>>, vector<1x32xf32>
      %46 = vector.broadcast %45 : vector<1x32xf32> to vector<34x32xf32>
      %47 = arith.mulf %44, %46 : vector<34x32xf32>
      %c0_23 = arith.constant 0 : index
      %c0_24 = arith.constant 0 : index
      %48 = vector.load %arg4[%c0_23, %c0_24] : memref<1x32xf32, #tpu.memory_space<vmem>>, vector<1x32xf32>
      %49 = vector.broadcast %48 : vector<1x32xf32> to vector<34x32xf32>
      %50 = arith.addf %47, %49 : vector<34x32xf32>
      %51 = arith.truncf %50 : vector<34x32xf32> to vector<34x32xbf16>
      %c0_25 = arith.constant 0 : index
      %c0_26 = arith.constant 0 : index
      %52 = vector.load %arg10[%c0_25, %c0_26] : memref<34x32xbf16, #tpu.memory_space<vmem>>, vector<34x32xbf16>
      tpu.vector_store %arg10[%c0_25, %c0_26], %51 {strides = array<i32>} : memref<34x32xbf16, #tpu.memory_space<vmem>>, vector<34x32xbf16>,
    } else {
    }
    %c0 = arith.constant 0 : index
    %c0_1 = arith.constant 0 : index
    %3 = vector.load %arg10[%c0, %c0_1] : memref<34x32xbf16, #tpu.memory_space<vmem>>, vector<34x32xbf16>
    %c0_2 = arith.constant 0 : index
    %c0_3 = arith.constant 0 : index
    %4 = vector.load %arg5[%c0_2, %c0_3] : memref<32x64xbf16, #tpu.memory_space<vmem>>, vector<32x64xbf16>
    %cst = arith.constant dense<0.000000e+00> : vector<34x64xf32>
    %5 = tpu.matmul %3, %4, %cst {dimension_numbers = #tpu.dot_dimension_numbers<[1], [0], [0], [1], [0, 0, 1, 1], [], []>} : vector<34x32xbf16>, vector<32x64xbf16>, vector<34x64xf32> -> vector<34x64xf32>
    %c0_4 = arith.constant 0 : index
    %c0_5 = arith.constant 0 : index
    %6 = vector.load %arg6[%c0_4, %c0_5] : memref<1x64xbf16, #tpu.memory_space<vmem>>, vector<1x64xbf16>
    %7 = arith.extf %6 : vector<1x64xbf16> to vector<1x64xf32>
    %8 = vector.broadcast %7 : vector<1x64xf32> to vector<34x64xf32>
    %9 = arith.addf %5, %8 : vector<34x64xf32>
    %c0_6 = arith.constant 0 : index
    %c0_7 = arith.constant 0 : index
    %10 = vector.load %arg7[%c0_6, %c0_7] : memref<32x64xbf16, #tpu.memory_space<vmem>>, vector<32x64xbf16>
    %cst_8 = arith.constant dense<0.000000e+00> : vector<34x64xf32>
    %11 = tpu.matmul %3, %10, %cst_8 {dimension_numbers = #tpu.dot_dimension_numbers<[1], [0], [0], [1], [0, 0, 1, 1], [], []>} : vector<34x32xbf16>, vector<32x64xbf16>, vector<34x64xf32> -> vector<34x64xf32>
    %c0_9 = arith.constant 0 : index
    %c0_10 = arith.constant 0 : index
    %12 = vector.load %arg8[%c0_9, %c0_10] : memref<1x64xbf16, #tpu.memory_space<vmem>>, vector<1x64xbf16>
    %13 = arith.extf %12 : vector<1x64xbf16> to vector<1x64xf32>
    %14 = vector.broadcast %13 : vector<1x64xf32> to vector<34x64xf32>
    %15 = arith.addf %11, %14 : vector<34x64xf32>
    %16 = arith.negf %9 : vector<34x64xf32>
    %17 = math.exp %16 : vector<34x64xf32>
    %cst_11 = arith.constant 1.000000e+00 : f32
    %18 = vector.broadcast %cst_11 : f32 to vector<34x64xf32>
    %19 = arith.addf %18, %17 : vector<34x64xf32>
    %20 = arith.divf %18, %19 : vector<34x64xf32>
    %21 = arith.mulf %9, %20 : vector<34x64xf32>
    %22 = arith.mulf %21, %15 : vector<34x64xf32>
    %23 = arith.truncf %22 : vector<34x64xf32> to vector<34x64xbf16>
    %c0_12 = arith.constant 0 : index
    %c0_13 = arith.constant 0 : index
    %24 = vector.load %arg9[%c0_12, %c0_13] : memref<34x64xbf16, #tpu.memory_space<vmem>>, vector<34x64xbf16>
    tpu.vector_store %arg9[%c0_12, %c0_13], %23 {strides = array<i32>} : memref<34x64xbf16, #tpu.memory_space<vmem>>, vector<34x64xbf16>,
    return
  }
  func.func @transform_0(%arg0: i32, %arg1: i32) -> (i32, i32) {
    %c0_i32 = arith.constant 0 : i32
    %c0_i32_0 = arith.constant 0 : i32
    return %arg0, %c0_i32 : i32, i32
  }
  func.func @transform_1(%arg0: i32, %arg1: i32) -> (i32, i32) {
    %c0_i32 = arith.constant 0 : i32
    %c0_i32_0 = arith.constant 0 : i32
    %c0_i32_1 = arith.constant 0 : i32
    return %c0_i32, %c0_i32_0 : i32, i32
  }
  func.func @transform_2(%arg0: i32, %arg1: i32) -> (i32, i32) {
    %c0_i32 = arith.constant 0 : i32
    %c0_i32_0 = arith.constant 0 : i32
    %c0_i32_1 = arith.constant 0 : i32
    return %c0_i32, %c0_i32_0 : i32, i32
  }
  func.func @transform_3(%arg0: i32, %arg1: i32) -> (i32, i32) {
    %c0_i32 = arith.constant 0 : i32
    %c0_i32_0 = arith.constant 0 : i32
    return %c0_i32, %arg1 : i32, i32
  }
  func.func @transform_4(%arg0: i32, %arg1: i32) -> (i32, i32) {
    %c0_i32 = arith.constant 0 : i32
    %c0_i32_0 = arith.constant 0 : i32
    return %c0_i32, %arg1 : i32, i32
  }
  func.func @transform_5(%arg0: i32, %arg1: i32) -> (i32, i32) {
    %c0_i32 = arith.constant 0 : i32
    %c0_i32_0 = arith.constant 0 : i32
    return %c0_i32, %arg1 : i32, i32
  }
  func.func @transform_6(%arg0: i32, %arg1: i32) -> (i32, i32) {
    %c0_i32 = arith.constant 0 : i32
    %c0_i32_0 = arith.constant 0 : i32
    return %c0_i32, %arg1 : i32, i32
  }
  func.func @transform_7(%arg0: i32, %arg1: i32) -> (i32, i32) {
    %c0_i32 = arith.constant 0 : i32
    return %arg0, %arg1 : i32, i32
  }
}

module attributes {stable_mosaic.version = 11 : i64} {
  func.func @_matmul_bias_res_kernel(%arg0: i32, %arg1: i32, %arg2: memref<34x64xbf16, #tpu.memory_space<vmem>>, %arg3: memref<64x32xbf16, #tpu.memory_space<vmem>>, %arg4: memref<1x32xbf16, #tpu.memory_space<vmem>>, %arg5: memref<34x32xbf16, #tpu.memory_space<vmem>>, %arg6: memref<34x32xbf16, #tpu.memory_space<vmem>>) attributes {dimension_semantics = [#tpu.dimension_semantics<parallel>, #tpu.dimension_semantics<parallel>], iteration_bounds = array<i64: 1, 1>, scalar_prefetch = 0 : i64, scratch_operands = 0 : i64, tpu.core_type = #tpu.core_type<tc>, window_params = [{transform_indices = @transform_0, window_bounds = array<i64: 34, 64>}, {transform_indices = @transform_1, window_bounds = array<i64: 64, 32>}, {transform_indices = @transform_2, window_bounds = array<i64: 1, 32>}, {transform_indices = @transform_3, window_bounds = array<i64: 34, 32>}, {transform_indices = @transform_4, window_bounds = array<i64: 34, 32>}]} {
    %c0 = arith.constant 0 : index
    %c0_0 = arith.constant 0 : index
    %0 = vector.load %arg2[%c0, %c0_0] : memref<34x64xbf16, #tpu.memory_space<vmem>>, vector<34x64xbf16>
    %c0_1 = arith.constant 0 : index
    %c0_2 = arith.constant 0 : index
    %1 = vector.load %arg3[%c0_1, %c0_2] : memref<64x32xbf16, #tpu.memory_space<vmem>>, vector<64x32xbf16>
    %cst = arith.constant dense<0.000000e+00> : vector<34x32xf32>
    %2 = tpu.matmul %0, %1, %cst {dimension_numbers = #tpu.dot_dimension_numbers<[1], [0], [0], [1], [0, 0, 1, 1], [], []>} : vector<34x64xbf16>, vector<64x32xbf16>, vector<34x32xf32> -> vector<34x32xf32>
    %c0_3 = arith.constant 0 : index
    %c0_4 = arith.constant 0 : index
    %3 = vector.load %arg5[%c0_3, %c0_4] : memref<34x32xbf16, #tpu.memory_space<vmem>>, vector<34x32xbf16>
    %4 = arith.extf %3 : vector<34x32xbf16> to vector<34x32xf32>
    %5 = arith.addf %4, %2 : vector<34x32xf32>
    %c0_5 = arith.constant 0 : index
    %c0_6 = arith.constant 0 : index
    %6 = vector.load %arg4[%c0_5, %c0_6] : memref<1x32xbf16, #tpu.memory_space<vmem>>, vector<1x32xbf16>
    %7 = arith.extf %6 : vector<1x32xbf16> to vector<1x32xf32>
    %8 = vector.broadcast %7 : vector<1x32xf32> to vector<34x32xf32>
    %9 = arith.addf %5, %8 : vector<34x32xf32>
    %10 = arith.truncf %9 : vector<34x32xf32> to vector<34x32xbf16>
    %c0_7 = arith.constant 0 : index
    %c0_8 = arith.constant 0 : index
    %11 = vector.load %arg6[%c0_7, %c0_8] : memref<34x32xbf16, #tpu.memory_space<vmem>>, vector<34x32xbf16>
    tpu.vector_store %arg6[%c0_7, %c0_8], %10 {strides = array<i32>} : memref<34x32xbf16, #tpu.memory_space<vmem>>, vector<34x32xbf16>,
    return
  }
  func.func @transform_0(%arg0: i32, %arg1: i32) -> (i32, i32) {
    %c0_i32 = arith.constant 0 : i32
    %c0_i32_0 = arith.constant 0 : i32
    return %arg0, %c0_i32 : i32, i32
  }
  func.func @transform_1(%arg0: i32, %arg1: i32) -> (i32, i32) {
    %c0_i32 = arith.constant 0 : i32
    %c0_i32_0 = arith.constant 0 : i32
    return %c0_i32, %arg1 : i32, i32
  }
  func.func @transform_2(%arg0: i32, %arg1: i32) -> (i32, i32) {
    %c0_i32 = arith.constant 0 : i32
    %c0_i32_0 = arith.constant 0 : i32
    return %c0_i32, %arg1 : i32, i32
  }
  func.func @transform_3(%arg0: i32, %arg1: i32) -> (i32, i32) {
    %c0_i32 = arith.constant 0 : i32
    return %arg0, %arg1 : i32, i32
  }
  func.func @transform_4(%arg0: i32, %arg1: i32) -> (i32, i32) {
    %c0_i32 = arith.constant 0 : i32
    return %arg0, %arg1 : i32, i32
  }
}

module attributes {stable_mosaic.version = 11 : i64} {
  func.func @_ln_pool_kernel(%arg0: i32, %arg1: memref<1x17x32xbf16, #tpu.memory_space<vmem>>, %arg2: memref<1x32xf32, #tpu.memory_space<vmem>>, %arg3: memref<1x32xf32, #tpu.memory_space<vmem>>, %arg4: memref<1x1x64xf32, #tpu.memory_space<vmem>>) attributes {dimension_semantics = [#tpu.dimension_semantics<parallel>], iteration_bounds = array<i64: 2>, scalar_prefetch = 0 : i64, scratch_operands = 0 : i64, tpu.core_type = #tpu.core_type<tc>, window_params = [{transform_indices = @transform_0, window_bounds = array<i64: 1, 17, 32>}, {pipeline_mode = #tpu.pipeline_mode<synchronous>, transform_indices = @transform_1, window_bounds = array<i64: 1, 32>}, {pipeline_mode = #tpu.pipeline_mode<synchronous>, transform_indices = @transform_2, window_bounds = array<i64: 1, 32>}, {transform_indices = @transform_3, window_bounds = array<i64: 1, 1, 64>}]} {
    %c0 = arith.constant 0 : index
    %c0_0 = arith.constant 0 : index
    %c0_1 = arith.constant 0 : index
    %0 = vector.load %arg1[%c0, %c0_0, %c0_1] : memref<1x17x32xbf16, #tpu.memory_space<vmem>>, vector<1x17x32xbf16>
    %1 = vector.shape_cast %0 : vector<1x17x32xbf16> to vector<17x32xbf16>
    %2 = arith.extf %1 : vector<17x32xbf16> to vector<17x32xf32>
    %cst = arith.constant dense<0.000000e+00> : vector<17xf32>
    %3 = vector.multi_reduction <add>, %2, %cst [1] : vector<17x32xf32> to vector<17xf32>
    %4 = vector.shape_cast %3 : vector<17xf32> to vector<17x1xf32>
    %cst_2 = arith.constant 3.200000e+01 : f32
    %5 = vector.broadcast %cst_2 : f32 to vector<17x1xf32>
    %6 = arith.divf %4, %5 : vector<17x1xf32>
    %7 = vector.broadcast %6 : vector<17x1xf32> to vector<17x32xf32>
    %8 = arith.subf %2, %7 : vector<17x32xf32>
    %9 = arith.mulf %8, %8 : vector<17x32xf32>
    %cst_3 = arith.constant dense<0.000000e+00> : vector<17xf32>
    %10 = vector.multi_reduction <add>, %9, %cst_3 [1] : vector<17x32xf32> to vector<17xf32>
    %11 = vector.shape_cast %10 : vector<17xf32> to vector<17x1xf32>
    %cst_4 = arith.constant 3.200000e+01 : f32
    %12 = vector.broadcast %cst_4 : f32 to vector<17x1xf32>
    %13 = arith.divf %11, %12 : vector<17x1xf32>
    %14 = vector.broadcast %6 : vector<17x1xf32> to vector<17x32xf32>
    %15 = arith.subf %2, %14 : vector<17x32xf32>
    %cst_5 = arith.constant 9.99999997E-7 : f32
    %16 = vector.broadcast %cst_5 : f32 to vector<17x1xf32>
    %17 = arith.addf %13, %16 : vector<17x1xf32>
    %18 = math.rsqrt %17 : vector<17x1xf32>
    %19 = vector.broadcast %18 : vector<17x1xf32> to vector<17x32xf32>
    %20 = arith.mulf %15, %19 : vector<17x32xf32>
    %c0_6 = arith.constant 0 : index
    %c0_7 = arith.constant 0 : index
    %21 = vector.load %arg2[%c0_6, %c0_7] : memref<1x32xf32, #tpu.memory_space<vmem>>, vector<1x32xf32>
    %22 = vector.broadcast %21 : vector<1x32xf32> to vector<17x32xf32>
    %23 = arith.mulf %20, %22 : vector<17x32xf32>
    %c0_8 = arith.constant 0 : index
    %c0_9 = arith.constant 0 : index
    %24 = vector.load %arg3[%c0_8, %c0_9] : memref<1x32xf32, #tpu.memory_space<vmem>>, vector<1x32xf32>
    %25 = vector.broadcast %24 : vector<1x32xf32> to vector<17x32xf32>
    %26 = arith.addf %23, %25 : vector<17x32xf32>
    %27 = vector.extract_strided_slice %26 {offsets = [0, 0], sizes = [1, 32], strides = [1, 1]} : vector<17x32xf32> to vector<1x32xf32>
    %c0_10 = arith.constant 0 : index
    %c0_11 = arith.constant 0 : index
    %c0_12 = arith.constant 0 : index
    %28 = vector.load %arg4[%c0_10, %c0_11, %c0_12] : memref<1x1x64xf32, #tpu.memory_space<vmem>>, vector<1x1x32xf32>
    %29 = vector.shape_cast %28 : vector<1x1x32xf32> to vector<1x32xf32>
    %30 = vector.shape_cast %27 : vector<1x32xf32> to vector<1x1x32xf32>
    tpu.vector_store %arg4[%c0_10, %c0_11, %c0_12], %30 {strides = array<i32>} : memref<1x1x64xf32, #tpu.memory_space<vmem>>, vector<1x1x32xf32>,
    %31 = vector.extract_strided_slice %26 {offsets = [1, 0], sizes = [16, 32], strides = [1, 1]} : vector<17x32xf32> to vector<16x32xf32>
    %cst_13 = arith.constant dense<0.000000e+00> : vector<32xf32>
    %32 = vector.multi_reduction <add>, %31, %cst_13 [0] : vector<16x32xf32> to vector<32xf32>
    %33 = vector.shape_cast %32 : vector<32xf32> to vector<1x32xf32>
    %cst_14 = arith.constant 1.600000e+01 : f32
    %34 = vector.broadcast %cst_14 : f32 to vector<1x32xf32>
    %35 = arith.divf %33, %34 : vector<1x32xf32>
    %c0_15 = arith.constant 0 : index
    %c0_16 = arith.constant 0 : index
    %c32 = arith.constant 32 : index
    %36 = vector.load %arg4[%c0_15, %c0_16, %c32] : memref<1x1x64xf32, #tpu.memory_space<vmem>>, vector<1x1x32xf32>
    %37 = vector.shape_cast %36 : vector<1x1x32xf32> to vector<1x32xf32>
    %38 = vector.shape_cast %35 : vector<1x32xf32> to vector<1x1x32xf32>
    tpu.vector_store %arg4[%c0_15, %c0_16, %c32], %38 {strides = array<i32>} : memref<1x1x64xf32, #tpu.memory_space<vmem>>, vector<1x1x32xf32>,
    return
  }
  func.func @transform_0(%arg0: i32) -> (i32, i32, i32) {
    %c0_i32 = arith.constant 0 : i32
    %c0_i32_0 = arith.constant 0 : i32
    %c0_i32_1 = arith.constant 0 : i32
    return %arg0, %c0_i32, %c0_i32_0 : i32, i32, i32
  }
  func.func @transform_1(%arg0: i32) -> (i32, i32) {
    %c0_i32 = arith.constant 0 : i32
    %c0_i32_0 = arith.constant 0 : i32
    %c0_i32_1 = arith.constant 0 : i32
    return %c0_i32, %c0_i32_0 : i32, i32
  }
  func.func @transform_2(%arg0: i32) -> (i32, i32) {
    %c0_i32 = arith.constant 0 : i32
    %c0_i32_0 = arith.constant 0 : i32
    %c0_i32_1 = arith.constant 0 : i32
    return %c0_i32, %c0_i32_0 : i32, i32
  }
  func.func @transform_3(%arg0: i32) -> (i32, i32, i32) {
    %c0_i32 = arith.constant 0 : i32
    %c0_i32_0 = arith.constant 0 : i32
    %c0_i32_1 = arith.constant 0 : i32
    return %arg0, %c0_i32, %c0_i32_0 : i32, i32, i32
  }
}

</mosaic_0001>

<bundles_post_ra>
// kernel: fwd.15
= control target key start
LH: loop header
LB: loop body
LE: loop exit
PB: predicated region body
PF: predicated region fallthrough
CT: control target
= control target key end

     0   :  { %v235_v0 = vmov 0.0   ;;  %vm236_vm0 = vmmov 0   ;;  %vm52_vm1 = vcmask 261120   ;;  %v135_v6 = vlaneseq  ;;  %s307_s1 = inlined_call_operand.vmem [shape: bf16[32,32], index: 1, kind: input, shape index: {}]   ;;  %s308_s0 = inlined_call_operand.vmem [shape: bf16[34,32], index: 0, kind: input, shape index: {}]   ;;  %s309_s2 = inlined_call_operand.vmem [shape: bf16[1,32], index: 2, kind: input, shape index: {}]   ;;  %s310_s3 = inlined_call_operand.vmem [shape: bf16[34,32], index: 3, kind: input, shape index: {}, may-alias: {3,4}]   ;;  %s311_s4 = inlined_call_operand.vmem [shape: bf16[34,32], index: 4, kind: output, shape index: {}, may-alias: {3,4}]  }
   0x1   :  { %224 = vmatprep.subr.bf16.mxu1 %v235_v0  ;;  %v230_v1 = vld [vmem:[%s307_s1] sm:$0xff]   ;;  %208 = vmatprep.subr.bf16.mxu0 %v235_v0  ;;  %v231_v2 = vld [vmem:[%s307_s1 + $0x8] sm:$0xff]   ;;  %v234_v5 = vld [vmem:[%s308_s0 + $0x10] ss:$0 sps:$4 sm:$0x11]   ;;  %vm165_vm2 = vcmask 257024  }
   0x2   :  { %216 = vmatprep.mubr.msk.bf16.mxu1 %vm236_vm0, %v235_v0  ;;  %212 = vmatprep.mubr.msk.bf16.mxu0 %vm236_vm0, %v235_v0  ;;  %v232_v3 = vld [vmem:[%s308_s0 + $0x8] sm:$0xff]   ;;  %v233_v4 = vld [vmem:[%s308_s0] sm:$0xff]   ;;  %v136_v7 = vshrl.u32 %v135_v6, 7  ;;  %v122_v24 = vld [vmem:[%s310_s3 + $0x10] sm:$0x1]  ;;  %vm170_vm3 = vcmask 253952  }
   0x3   :  { %226 = vmatpush3.bf16.msra.mxu1 %v230_v1  ;;  %209 = vmatpush3.bf16.msra.mxu0 %v230_v1  ;;  %v133_v8 = vld [vmem:[%s309_s2] sm:$0x1]  ;;  %v202_v9 = vld [vmem:[%s310_s3 + $0x8] sm:$0xff]   ;;  %v127_v33 = vunpack.c.l.bf16 %v122_v24 }
   0x4   :  { %225 = vmatprep.subr.bf16.mxu1 %v235_v0  ;;  %210 = vmatprep.subr.bf16.mxu0 %v235_v0  ;;  %v195_v10 = vld [vmem:[%s310_s3] sm:$0xff]   ;;  %v134_v11 = vunpack.c.l.bf16 %v133_v8  ;;  %v137_v12 = vsub.s32 0, %v136_v7  ;;  %v200_v13 = vunpack.c.l.bf16 %v202_v9  ;;  %v201_v16 = vunpack.c.h.bf16 %v202_v9 }
   0x5   :  { %v196_v14 = vunpack.c.l.bf16 %v195_v10  ;;  %v197_v17 = vunpack.c.h.bf16 %v195_v10 }
   0x6   :  { %v138_v15 = vrot.slane %v134_v11, %v137_v12 }
   0x7   :  { %227 = vmatpush3.bf16.msra.mxu1 %v231_v2  ;;  %211 = vmatpush3.bf16.msra.mxu0 %v231_v2 }
   0xa   :  { %217 = vmatmul.mubr.msk.bf16.vlgmr.msra.gmra.mrb[0].mxu1 %vm52_vm1, %v232_v3  ;;  %213 = vmatmul.mubr.msk.bf16.vlgmr.msra.gmra.mrb[0].mxu0 %vm52_vm1, %v233_v4 }
   0xb   :  { %220 = vmatprep.mubr.msk.bf16.mxu1 %vm236_vm0, %v235_v0 }
  0x12   :  { %221 = vmatmul.mubr.msk.bf16.gmra.mrb[4].mxu1 %vm52_vm1, %v234_v5 }
  0xdd   :  { %v104_v18 = vpop.f32.mrb[0].mxu1  ;;  %v96_v19 = vpop.f32.mrb[0].mxu0 }
  0xde   :  { %v130_v20 = vadd.f32 %v200_v13, %v104_v18  ;;  %v218_v21 = vpop.f32.mrb[1].mxu1  ;;  %v128_v22 = vadd.f32 %v196_v14, %v96_v19  ;;  %v214_v23 = vpop.f32.mrb[1].mxu0 }
  0xdf   :  { %v107_v25 = vpop.f32.mrb[2].mxu1  ;;  %v99_v26 = vpop.f32.mrb[2].mxu0 }
  0xe0   :  { %v141_v27 = vadd.f32 %v138_v15, %v130_v20  ;;  %v131_v28 = vadd.f32 %v201_v16, %v107_v25  ;;  %v139_v29 = vadd.f32 %v138_v15, %v128_v22  ;;  %v219_v30 = vpop.f32.mrb[3].mxu1  ;;  %v129_v31 = vadd.f32 %v197_v17, %v99_v26  ;;  %v215_v32 = vpop.f32.mrb[3].mxu0 }
  0xe2   :  { %v191_v34 = vpack.c.bf16 %v141_v27, %v141_v27  ;;  %v142_v35 = vadd.f32 %v138_v15, %v131_v28  ;;  %v189_v36 = vpack.c.bf16 %v139_v29, %v139_v29  ;;  %v140_v37 = vadd.f32 %v138_v15, %v129_v31 }
  0xe4   :  { %168 = vst.msk [vmem:[%s311_s4 + $0x8] sm:$0xf] %vm165_vm2, %v191_v34  ;;  %v192_v38 = vpack.c.bf16 %v142_v35, %v142_v35  ;;  %166 = vst.msk [vmem:[%s311_s4] sm:$0xf] %vm165_vm2, %v189_v36  ;;  %v190_v39 = vpack.c.bf16 %v140_v37, %v140_v37 }
  0xe5   :  { %v112_v40 = vpop.f32.mrb[4].mxu1 }
  0xe6   :  { %169 = vst.msk [vmem:[%s311_s4 + $0xc] sm:$0xf] %vm165_vm2, %v192_v38  ;;  %167 = vst.msk [vmem:[%s311_s4 + $0x4] sm:$0xf] %vm165_vm2, %v190_v39  ;;  %v132_v41 = vadd.f32 %v127_v33, %v112_v40  ;;  %v222_v42 = vpop.f32.mrb[5].mxu1 }
  0xe7   :  { %v115_v43 = vpop.f32.mrb[6].mxu1 }
  0xe8   :  { %v143_v44 = vadd.f32 %v138_v15, %v132_v41  ;;  %v223_v45 = vpop.f32.mrb[7].mxu1 }
  0xea   :  { %v193_v46 = vpack.c.bf16 %v143_v44, %v143_v44 }
  0xec   :  { %171 = vst.msk [vmem:[%s311_s4 + $0x10] sm:$0x1] %vm170_vm3, %v193_v46 }

// kernel: fwd.13
= control target key start
LH: loop header
LB: loop body
LE: loop exit
PB: predicated region body
PF: predicated region fallthrough
CT: control target
= control target key end

     0   :  { %vm35_vm0 = vcmask 261120   ;;  %vm48_vm1 = vcmask 254976   ;;  %v374_v39 = vmov 0.0   ;;  %vm375_vm2 = vmmov 0   ;;  %s501_s0 = inlined_call_operand.vmem [shape: bf16[34,32], index: 0, kind: input, shape index: {}]   ;;  %s502_s3 = inlined_call_operand.vmem [shape: bf16[32,96], index: 3, kind: input, shape index: {}]   ;;  %s503_s1 = inlined_call_operand.vmem [shape: f32[1,32], index: 1, kind: input, shape index: {}]   ;;  %s504_s2 = inlined_call_operand.vmem [shape: f32[1,32], index: 2, kind: input, shape index: {}]   ;;  %s505_s4 = inlined_call_operand.vmem [shape: bf16[1,96], index: 4, kind: input, shape index: {}]   ;;  %s506_s5 = inlined_call_operand.vmem [shape: bf16[34,96], index: 5, kind: output, shape index: {}]  }
   0x1   :  { %v331_v0 = vld [vmem:[%s501_s0 + $0x8] sm:$0xff]   ;;  %v324_v1 = vld [vmem:[%s501_s0] sm:$0xff]   ;;  %v29_v5 = vld [vmem:[%s501_s0 + $0x10] sm:$0x1]  ;;  %353 = vmatprep.subr.bf16.mxu1 %v374_v39  ;;  %337 = vmatprep.subr.bf16.mxu0 %v374_v39  ;;  %vm148_vm3 = vcmask 257024   ;;  %vm153_vm4 = vcmask 253952  }
   0x2   :  { %v329_v2 = vunpack.c.l.bf16 %v331_v0  ;;  %v330_v3 = vunpack.c.h.bf16 %v331_v0  ;;  %v325_v4 = vunpack.c.l.bf16 %v324_v1  ;;  %v326_v6 = vunpack.c.h.bf16 %v324_v1  ;;  %v359_v38 = vld [vmem:[%s502_s3] sm:$0xff]   ;;  %v360_v40 = vld [vmem:[%s502_s3 + $0x8] sm:$0xff]   ;;  %345 = vmatprep.mubr.msk.bf16.mxu1 %vm375_vm2, %v374_v39  ;;  %341 = vmatprep.mubr.msk.bf16.mxu0 %vm375_vm2, %v374_v39 }
   0x3   :  { %v34_v10 = vunpack.c.l.bf16 %v29_v5  ;;  %355 = vmatpush3.bf16.msra.mxu1 %v359_v38  ;;  %338 = vmatpush3.bf16.msra.mxu0 %v359_v38  ;;  %v293_v57 = vld [vmem:[%s503_s1] ss:$0 sm:$0xff]  ;;  %vm282_vm5 = vcmask 781312   ;;  %vm287_vm6 = vcmask 778240  }
   0x4   :  { %v42_v7 = vsel %vm35_vm0, %v329_v2, 0.0  ;;  %v36_v8 = vsel %vm35_vm0, %v325_v4, 0.0  ;;  %v45_v9 = vsel %vm35_vm0, %v330_v3, 0.0  ;;  %v39_v11 = vsel %vm35_vm0, %v326_v6, 0.0  ;;  %354 = vmatprep.subr.bf16.mxu1 %v374_v39  ;;  %339 = vmatprep.subr.bf16.mxu0 %v374_v39  ;;  %v294_v59 = vld [vmem:[%s504_s2] ss:$0 sm:$0xff] }
   0x5   :  { %43 = vadd.xlane.f32.xlu0 %v42_v7  ;;  %37 = vadd.xlane.f32.xlu1 %v36_v8  ;;  %v49_v12 = vsel %vm48_vm1, %v34_v10, 0.0 }
   0x7   :  { %356 = vmatpush3.bf16.msra.mxu1 %v360_v40  ;;  %340 = vmatpush3.bf16.msra.mxu0 %v360_v40 }
   0x9   :  { %46 = vadd.xlane.f32.xlu0 %v45_v9  ;;  %40 = vadd.xlane.f32.xlu1 %v39_v11 }
   0xd   :  { %50 = vadd.xlane.f32.xlu0 %v49_v12 }
  0x92   :  { %v44_v13 = vpop.xlane.xlu0 %43  ;;  %v38_v14 = vpop.xlane.xlu1 %37 }
  0x93   :  { %v55_v15 = vmul.f32 0.03125, %v44_v13  ;;  %v53_v16 = vmul.f32 0.03125, %v38_v14 }
  0x95   :  { %v420_v17 = vsub.f32 %v329_v2, %v55_v15  ;;  %v422_v18 = vsub.f32 %v325_v4, %v53_v16 }
  0x96   :  { %v47_v19 = vpop.xlane.xlu0 %46  ;;  %v41_v20 = vpop.xlane.xlu1 %40 }
  0x97   :  { %v56_v21 = vmul.f32 0.03125, %v47_v19  ;;  %v65_v22 = vmul.f32 %v420_v17, %v420_v17  ;;  %v54_v23 = vmul.f32 0.03125, %v41_v20  ;;  %v63_v24 = vmul.f32 %v422_v18, %v422_v18 }
  0x99   :  { %v428_v25 = vsub.f32 %v330_v3, %v56_v21  ;;  %v74_v26 = vsel %vm35_vm0, %v65_v22, 0.0  ;;  %v431_v27 = vsub.f32 %v326_v6, %v54_v23  ;;  %v68_v31 = vsel %vm35_vm0, %v63_v24, 0.0  ;;  %v164_v24 = vld [vmem:[%s505_s4] sm:$0x1] }
  0x9a   :  { %v51_v28 = vpop.xlane.xlu0 %50  ;;  %75 = vadd.xlane.f32.xlu1 %v74_v26  ;;  %v166_v22 = vlaneseq }
  0x9b   :  { %v57_v29 = vmul.f32 0.03125, %v51_v28  ;;  %v66_v30 = vmul.f32 %v428_v25, %v428_v25  ;;  %v64_v32 = vmul.f32 %v431_v27, %v431_v27 }
  0x9c   :  { %v167_v23 = vshrl.u32 %v166_v22, 7 }
  0x9d   :  { %v438_v33 = vsub.f32 %v34_v10, %v57_v29  ;;  %v77_v34 = vsel %vm35_vm0, %v66_v30, 0.0  ;;  %v71_v36 = vsel %vm35_vm0, %v64_v32, 0.0 }
  0x9e   :  { %78 = vadd.xlane.f32.xlu0 %v77_v34  ;;  %69 = vadd.xlane.f32.xlu1 %v68_v31  ;;  %v168_v26 = vsub.s32 0, %v167_v23 }
  0x9f   :  { %v67_v35 = vmul.f32 %v438_v33, %v438_v33 }
  0xa1   :  { %v80_v37 = vsel %vm48_vm1, %v67_v35, 0.0 }
  0xa2   :  { %81 = vadd.xlane.f32.xlu1 %v80_v37  ;;  %72 = vadd.xlane.f32.xlu0 %v71_v36 }
 0x127   :  { %v76_v41 = vpop.xlane.xlu1 %75 }
 0x128   :  { %v85_v42 = vmul.f32 0.03125, %v76_v41 }
 0x12a   :  { %v90_v43 = vadd.f32 1e-06, %v85_v42 }
 0x12b   :  { %v79_v44 = vpop.xlane.xlu0 %78  ;;  %v70_v45 = vpop.xlane.xlu1 %69 }
 0x12c   :  { %364 = vrsqrt.f32 %v90_v43  ;;  %v86_v46 = vmul.f32 0.03125, %v79_v44  ;;  %v83_v47 = vmul.f32 0.03125, %v70_v45 }
 0x12e   :  { %v91_v48 = vadd.f32 1e-06, %v86_v46  ;;  %v88_v49 = vadd.f32 1e-06, %v83_v47 }
 0x12f   :  { %v73_v50 = vpop.xlane.xlu0 %72  ;;  %v82_v51 = vpop.xlane.xlu1 %81 }
 0x130   :  { %366 = vrsqrt.f32 %v91_v48  ;;  %v84_v52 = vmul.f32 0.03125, %v73_v50  ;;  %v87_v53 = vmul.f32 0.03125, %v82_v51 }
 0x131   :  { %368 = vrsqrt.f32 %v88_v49 }
 0x132   :  { %v89_v54 = vadd.f32 1e-06, %v84_v52  ;;  %v92_v55 = vadd.f32 1e-06, %v87_v53 }
 0x134   :  { %370 = vrsqrt.f32 %v89_v54 }
 0x135   :  { %372 = vrsqrt.f32 %v92_v55 }
 0x136   :  { %v365_v56 = vpop.eup %364 }
 0x137   :  { %v100_v58 = vmul.f32 %v365_v56, %v420_v17 }
 0x139   :  { %v112_v60 = vmul.f32 %v293_v57, %v100_v58 }
 0x13a   :  { %v367_v61 = vpop.eup %366 }
 0x13b   :  { %v369_v62 = vpop.eup %368  ;;  %v124_v63 = vadd.f32 %v294_v59, %v112_v60  ;;  %v101_v0 = vmul.f32 %v367_v61, %v428_v25  ;;  %v165_v25 = vunpack.c.l.bf16 %v164_v24 }
 0x13c   :  { %v98_v1 = vmul.f32 %v369_v62, %v422_v18 }
 0x13d   :  { %v315_v2 = vpack.c.bf16 %v124_v63, %v124_v63  ;;  %v113_v3 = vmul.f32 %v293_v57, %v101_v0 }
 0x13e   :  { %v371_v4 = vpop.eup %370  ;;  %v110_v5 = vmul.f32 %v293_v57, %v98_v1 }
 0x13f   :  { %v373_v6 = vpop.eup %372  ;;  %151 = vst.msk [vmem:[#allocation2 + $0x8] sm:$0xf] %vm148_vm3, %v315_v2  ;;  %v125_v7 = vadd.f32 %v294_v59, %v113_v3  ;;  %v99_v8 = vmul.f32 %v371_v4, %v431_v27  ;;  %v169_v27 = vrot.slane %v165_v25, %v168_v26 }
 0x140   :  { %v122_v9 = vadd.f32 %v294_v59, %v110_v5  ;;  %v102_v10 = vmul.f32 %v373_v6, %v438_v33 }
 0x141   :  { %v316_v11 = vpack.c.bf16 %v125_v7, %v125_v7  ;;  %v111_v12 = vmul.f32 %v293_v57, %v99_v8 }
 0x142   :  { %v313_v13 = vpack.c.bf16 %v122_v9, %v122_v9  ;;  %v114_v14 = vmul.f32 %v293_v57, %v102_v10 }
 0x143   :  { %152 = vst.msk [vmem:[#allocation2 + $0xc] sm:$0xf] %vm148_vm3, %v316_v11  ;;  %v123_v15 = vadd.f32 %v294_v59, %v111_v12 }
 0x144   :  { %149 = vst.msk [vmem:[#allocation2] sm:$0xf] %vm148_vm3, %v313_v13  ;;  %v126_v16 = vadd.f32 %v294_v59, %v114_v14 }
 0x145   :  { %v314_v17 = vpack.c.bf16 %v123_v15, %v123_v15 }
 0x146   :  { %v317_v18 = vpack.c.bf16 %v126_v16, %v126_v16 }
 0x147   :  { %150 = vst.msk [vmem:[#allocation2 + $0x4] sm:$0xf] %vm148_vm3, %v314_v17 }
 0x148   :  { %154 = vst.msk [vmem:[#allocation2 + $0x10] sm:$0x1] %vm153_vm4, %v317_v18 }
 0x14a   :  { %v361_v19 = vld [vmem:[#allocation2 + $0x8] sm:$0xff]  }
 0x14b   :  { %346 = vmatmul.mubr.msk.bf16.vlgmr.msra.gmra.mrb[0].mxu1 %vm35_vm0, %v361_v19 }
 0x14c   :  { %349 = vmatprep.mubr.msk.bf16.mxu1 %vm375_vm2, %v374_v39 }
 0x14e   :  { %v362_v20 = vld [vmem:[#allocation2] sm:$0xff]  }
 0x14f   :  { %342 = vmatmul.mubr.msk.bf16.vlgmr.msra.gmra.mrb[0].mxu0 %vm35_vm0, %v362_v20  ;;  %v363_v21 = vld [vmem:[#allocation2 + $0x10] ss:$0 sps:$4 sm:$0x11]  }
 0x153   :  { %350 = vmatmul.mubr.msk.bf16.gmra.mrb[4].mxu1 %vm35_vm0, %v363_v21 }
 0x21e   :  { %v247_v28 = vpop.f32.mrb[0].mxu1 }
 0x21f   :  { %v248_v29 = vadd.f32 %v247_v28, %v169_v27  ;;  %v347_v30 = vpop.f32.mrb[1].mxu1 }
 0x220   :  { %v250_v31 = vpop.f32.mrb[2].mxu1 }
 0x221   :  { %v320_v32 = vpack.c.bf16 %v248_v29, %v248_v29  ;;  %v251_v33 = vadd.f32 %v250_v31, %v169_v27  ;;  %v348_v34 = vpop.f32.mrb[3].mxu1 }
 0x222   :  { %v239_v35 = vpop.f32.mrb[0].mxu0 }
 0x223   :  { %285 = vst.msk [vmem:[%s506_s5 + $0x8] sm:$0xf] %vm282_vm5, %v320_v32  ;;  %v321_v36 = vpack.c.bf16 %v251_v33, %v251_v33  ;;  %v240_v37 = vadd.f32 %v239_v35, %v169_v27  ;;  %v343_v38 = vpop.f32.mrb[1].mxu0 }
 0x224   :  { %v242_v39 = vpop.f32.mrb[2].mxu0 }
 0x225   :  { %286 = vst.msk [vmem:[%s506_s5 + $0xc] sm:$0xf] %vm282_vm5, %v321_v36  ;;  %v318_v40 = vpack.c.bf16 %v240_v37, %v240_v37  ;;  %v243_v41 = vadd.f32 %v242_v39, %v169_v27  ;;  %v344_v42 = vpop.f32.mrb[3].mxu0 }
 0x226   :  { %v255_v43 = vpop.f32.mrb[4].mxu1 }
 0x227   :  { %283 = vst.msk [vmem:[%s506_s5] sm:$0xf] %vm282_vm5, %v318_v40  ;;  %v319_v44 = vpack.c.bf16 %v243_v41, %v243_v41  ;;  %v256_v45 = vadd.f32 %v255_v43, %v169_v27  ;;  %v351_v46 = vpop.f32.mrb[5].mxu1 }
 0x228   :  { %v258_v47 = vpop.f32.mrb[6].mxu1 }
 0x229   :  { %284 = vst.msk [vmem:[%s506_s5 + $0x4] sm:$0xf] %vm282_vm5, %v319_v44  ;;  %v322_v48 = vpack.c.bf16 %v256_v45, %v256_v45  ;;  %v352_v49 = vpop.f32.mrb[7].mxu1 }
 0x22b   :  { %288 = vst.msk [vmem:[%s506_s5 + $0x10] sm:$0x1] %vm287_vm6, %v322_v48 }

// kernel: fwd.12
= control target key start
LH: loop header
LB: loop body
LE: loop exit
PB: predicated region body
PF: predicated region fallthrough
CT: control target
= control target key end

     0   :  { %s545_s21 = smov 0   ;;  %s604_s0 = inlined_call_operand.vmem [shape: bf16[2,16,48], index: 0, kind: input, shape index: {}]   ;;  %s605_s1 = inlined_call_operand.vmem [shape: bf16[48,32], index: 1, kind: input, shape index: {}]   ;;  %s606_s2 = inlined_call_operand.vmem [shape: bf16[1,32], index: 2, kind: input, shape index: {}]   ;;  %s607_s3 = inlined_call_operand.vmem [shape: bf16[1,32], index: 3, kind: input, shape index: {}]   ;;  %s608_s4 = inlined_call_operand.vmem [shape: bf16[1,32], index: 4, kind: input, shape index: {}]   ;;  %s609_s5 = inlined_call_operand.vmem [shape: bf16[16,32], index: 5, kind: input, shape index: {}]   ;;  %s610_s6 = inlined_call_operand.vmem [shape: bf16[2,17,32], index: 6, kind: output, shape index: {}]  }
   0x1 LB: > { %s447_s22 = sadd.s32 4294967295, %s506_s21   ;;  %p451_p0 = scmp.ge.s32.totalorder %s506_s21, 1  ;;  %s506_s21 = sphi %s545_s21, %s16_s21  }
   0x2   : > { %p212_p1 = scmp.lt.s32.totalorder %s506_s21, 3 }
   0x4   : > { %p213_p2 = pnand %p451_p0, %p212_p1 }
   0x5   : > { %v496_v0 = vld [vmem:[%s605_s1] sm:$0xff] (!%p213_p2)   ;;  %v508_v1 = vmov (!%p213_p2), 0.0   ;;  %v497_v2 = vld [vmem:[%s605_s1 + $0x8] sm:$0xff] (!%p213_p2)   ;;  %vm509_vm0 = vmmov (!%p213_p2), 0   ;;  %p242_p3 = scmp.lt.s32.totalorder (!%p213_p2), %s447_s22, 1  ;;  %v498_v3 = vld [vmem:[%s605_s1 + $0x10] sm:$0xff] (!%p213_p2)   ;;  %v263_v14 = vlaneseq (!%p213_p2) }
   0x6   : > { %216 = sbr.rel (%p213_p2) target bundleno = 246 (0xf6), region = 44  ;;  %475 = vmatprep.subr.bf16.mxu0 (!%p213_p2), %v508_v1  ;;  %481 = vmatprep.mubr.msk.bf16.mxu0 (!%p213_p2), %vm509_vm0, %v508_v1  ;;  %vm290_vm1 = vcmask (!%p213_p2), 392192   ;;  %v341_v5 = vld [vmem:[%s607_s3] sm:$0x1] (!%p213_p2)  ;;  %vm347_vm2 = vcmask (!%p213_p2), 253952   ;;  %vm381_vm5 = vcmask (!%p213_p2), 257024  }
   0x7   : > { %476 = vmatpush3.bf16.msra.mxu0 (!%p213_p2), %v496_v0  ;;  %v343_v6 = vld [vmem:[%s608_s4] sm:$0x1] (!%p213_p2)  ;;  %v342_v7 = vunpack.c.l.bf16 (!%p213_p2), %v341_v5  ;;  %vm348_vm3 = vsmask.f32 (!%p213_p2), 256  ;;  %v264_v15 = vshrl.u32 (!%p213_p2), %v263_v14, 7 }
   0x8   : > { %477 = vmatprep.subr.bf16.mxu0 (!%p213_p2), %v508_v1  ;;  %v344_v8 = vunpack.c.l.bf16 (!%p213_p2), %v343_v6  ;;  %vm577_vm4 = vmand (!%p213_p2), %vm347_vm2, %vm348_vm3  ;;  %v261_v16 = vld [vmem:[%s606_s2] sm:$0x1] (!%p213_p2)  ;;  %vm382_vm6 = vsmask.f32 (!%p213_p2), 7938  ;;  %vm359_vm7 = vsmask.f32 (!%p213_p2), 4368 }
   0x9   : > { %v262_v17 = vunpack.c.l.bf16 (!%p213_p2), %v261_v16  ;;  %v265_v18 = vsub.s32 (!%p213_p2), 0, %v264_v15  ;;  %v468_v19 = vld [vmem:[%s609_s5] sm:$0xff] (!%p213_p2)   ;;  %vm383_vm8 = vmand (!%p213_p2), %vm381_vm5, %vm382_vm6 }
   0xa   : > { %v345_v9 = vadd.f32 (!%p213_p2), %v344_v8, %v342_v7  ;;  %v469_v21 = vunpack.c.l.bf16 (!%p213_p2), %v468_v19  ;;  %v470_v25 = vunpack.c.h.bf16 (!%p213_p2), %v468_v19  ;;  %vm360_vm9 = vmor (!%p213_p2), %vm348_vm3, %vm359_vm7 }
   0xb   : > { %478 = vmatpush3.bf16.msra.mxu0 (!%p213_p2), %v497_v2  ;;  %v266_v20 = vrot.slane (!%p213_p2), %v262_v17, %v265_v18 }
   0xc   : > { %479 = vmatprep.subr.bf16.mxu0 (!%p213_p2), %v508_v1  ;;  %v346_v10 = vpack.c.bf16 (!%p213_p2), %v345_v9, %v345_v9 }
   0xd   : > { %s614_s22 = smov (!%p242_p3, %s447_s22), 1 }
   0xe   : > { %s464_s29 = sshll.u32 %s614_s22, 3  ;;  %s485_s9 = smul.u32 12, %s614_s22 }
   0xf   : > { %s246_s8 = scalar_lea.vmem %s604_s0, %s464_s29  ;;  %480 = vmatpush3.bf16.msra.mxu0 %v498_v3 }
  0x10   : > { %v499_v4 = vld [vmem:[%s246_s8] sm:$0xff]   ;;  %s574_s16 = scalar_lea.vmem %s610_s6, %s485_s9 }
  0x11   : > { %v350_v12 = vld [vmem:[%s574_s16] sm:$0x1]  ;;  %v389_v41 = vld [vmem:[%s574_s16 + $0x8] sm:$0x1] }
  0x12   : > { %482 = vmatmul.mubr.msk.bf16.vlgmr.msra.gmra.mrb[0].mxu0 %vm290_vm1, %v499_v4  ;;  %v351_v13 = vsel %vm577_vm4, %v346_v10, %v350_v12 }
  0x13   : > { %352 = vst [vmem:[%s574_s16] sm:$0x1] %v351_v13 }
  0x1a   : > { %v384_v37 = vld [vmem:[%s574_s16] sm:$0xf] }
  0xe5   : > { %v328_v22 = vpop.f32.mrb[0].mxu0 }
  0xe6   : > { %v329_v23 = vadd.f32 %v328_v22, %v266_v20  ;;  %v483_v24 = vpop.f32.mrb[1].mxu0 }
  0xe7   : > { %v331_v26 = vpop.f32.mrb[2].mxu0 }
  0xe8   : > { %v339_v27 = vadd.f32 %v469_v21, %v329_v23  ;;  %v332_v28 = vadd.f32 %v331_v26, %v266_v20  ;;  %v484_v29 = vpop.f32.mrb[3].mxu0 }
  0xea   : > { %v465_v30 = vpack.c.bf16 %v339_v27, %v339_v27  ;;  %v340_v31 = vadd.f32 %v470_v25, %v332_v28 }
  0xec   : > { %v362_v32 = vshrl.u32 %v465_v30, 16  ;;  %v466_v33 = vpack.c.bf16 %v340_v31, %v340_v31  ;;  %v365_v35 = vshll.u32 %v465_v30, 16 }
  0xee   : > { %v364_v34 = vrot.slane %v362_v32, 7  ;;  %v370_v36 = vshrl.u32 %v466_v33, 16  ;;  %v373_v40 = vshll.u32 %v466_v33, 16 }
  0xf0   : > { %v367_v38 = vor.u32 %v365_v35, %v364_v34  ;;  %v372_v39 = vrot.slane %v370_v36, 7  ;;  %v368_v42 = vrot.slane %v364_v34, 4 }
  0xf2   : > { %v385_v43 = vsel %vm383_vm8, %v367_v38, %v384_v37  ;;  %v375_v44 = vor.u32 %v373_v40, %v372_v39  ;;  %v377_v45 = vrot.slane %v372_v39, 4 }
  0xf3   : > { %386 = vst [vmem:[%s574_s16] sm:$0xf] %v385_v43 }
  0xf4   : > { %v376_v46 = vsel %vm360_vm9, %v368_v42, %v375_v44  ;;  %v390_v47 = vsel %vm577_vm4, %v377_v45, %v389_v41 }
  0xf5   : > { %388 = vst.msk [vmem:[%s574_s16 + $0x4] sm:$0xf] %vm381_vm5, %v376_v46  ;;  %391 = vst [vmem:[%s574_s16 + $0x8] sm:$0x1] %v390_v47 }
  0xf6 PF: > { %s16_s21 = sadd.s32 1, %s506_s21  }
  0xf7   : > { %p13_p4 = scmp.ge.s32.totalorder %s16_s21, 4  }
  0xf9   :  { %15 = sbr.rel (!%p13_p4) target bundleno = 1 (0x1), region = 74 }

// kernel: fwd.14
= control target key start
LH: loop header
LB: loop body
LE: loop exit
PB: predicated region body
PF: predicated region fallthrough
CT: control target
= control target key end

     0   :  { %s1225_s6 = smov 0   ;;  %s1381_s0 = inlined_call_operand.vmem [shape: bf16[2,17,96], index: 0, kind: input, shape index: {}]   ;;  %s1382_s1 = inlined_call_operand.vmem [shape: bf16[2,17,32], index: 1, kind: output, shape index: {}]  }
   0x1 LB: > { %s961_s7 = sadd.s32 4294967295, %s1198_s6   ;;  %p965_p0 = scmp.ge.s32.totalorder %s1198_s6, 1  ;;  %s1198_s6 = sphi %s1225_s6, %s11_s6  }
   0x2   : > { %p87_p1 = scmp.lt.s32.totalorder %s1198_s6, 3 }
   0x4   : > { %p88_p2 = pnand %p965_p0, %p87_p1 }
   0x5   : > { %p107_p3 = scmp.lt.s32.totalorder (!%p88_p2), %s961_s7, 1  ;;  %s1200_s12 = smov (!%p88_p2), 96   ;;  %vm145_vm0 = vcmask (!%p88_p2), 64512   ;;  %vm213_vm1 = vcmask (!%p88_p2), 131072   ;;  %vm206_vm2 = vcmask (!%p88_p2), 138240   ;;  %vm254_vm3 = vcmask (!%p88_p2), 1040384  }
   0x6   : > { %91 = sbr.rel (%p88_p2) target bundleno = 2684 (0xa7c), region = 24  ;;  %s1201_s13 = smov (!%p88_p2), 64   ;;  %v1204_v40 = vmov (!%p88_p2), 0   ;;  %vm324_vm4 = vcmask (!%p88_p2), 57344   ;;  %vm325_vm5 = vsmask.f32 (!%p88_p2), 256 }
   0x7   : > { %s1202_s14 = smov (!%p88_p2), 88   ;;  %s1203_s15 = smov (!%p88_p2), 120   ;;  %v1271_v41 = vsel (!%p88_p2), %vm254_vm3, 65535, %v1204_v40  ;;  %vm326_vm6 = vmand (!%p88_p2), %vm324_vm4, %vm325_vm5  ;;  %vm321_vm7 = vcmask (!%p88_p2), 60416   ;;  %vm517_vm8 = vcmask (!%p88_p2), 122944   ;;  %vm709_vm10 = vcmask (!%p88_p2), 188544  }
   0x8   : > { %s1205_s19 = smov (!%p88_p2), 56   ;;  %s1206_s20 = smov (!%p88_p2), 80   ;;  %vm518_vm9 = vmand (!%p88_p2), %vm517_vm8, %vm325_vm5  ;;  %vm514_vm11 = vcmask (!%p88_p2), 126016   ;;  %vm706_vm13 = vcmask (!%p88_p2), 191616   ;;  %vm901_vm14 = vcmask (!%p88_p2), 254144  }
   0x9   : > { %s1207_s21 = smov (!%p88_p2), 112   ;;  %s1208_s22 = smov (!%p88_p2), 48   ;;  %vm710_vm12 = vmand (!%p88_p2), %vm709_vm10, %vm325_vm5 }
   0xa   : > { %s1209_s23 = smov (!%p88_p2), 72   ;;  %s1210_s24 = smov (!%p88_p2), 104   ;;  %vm902_vm15 = vmand (!%p88_p2), %vm901_vm14, %vm325_vm5 }
   0xb   : > { %s1211_s25 = smov (!%p88_p2), 40   ;;  %s1212_s26 = smov (!%p88_p2), 8  }
   0xc   : > { %s1213_s27 = smov (!%p88_p2), 16   ;;  %s1214_s28 = smov (!%p88_p2), 24  }
   0xd   : > { %s1384_s7 = smov (!%p107_p3, %s961_s7), 1 }
   0xe   : > { %s1118_s8 = smul.u32 12, %s1384_s7 }
  0x10   : > { %s111_s11 = scalar_lea.vmem %s1381_s0, %s1118_s8  ;;  %s1287_s18 = scalar_lea.vmem %s1382_s1, %s1118_s8 }
  0x11   : > { %v119_v0 = vld [vmem:[%s111_s11] sm:$0xf]  ;;  %v120_v1 = vld [vmem:[%s111_s11 + $0x4] sm:$0xf]  ;;  %v121_v2 = vld [vmem:[%s111_s11 + $0x8] sm:$0x1] }
  0x12   : > { %v1241_v3 = vcombine.low %v119_v0, %v120_v1  ;;  %v122_v4 = vmul.bf16 1052065461, %v119_v0  ;;  %v123_v5 = vmul.bf16 1052065461, %v120_v1  ;;  %v1244_v6 = vcombine.low %v121_v2, %v121_v2  ;;  %v327_v59 = vld [vmem:[%s1287_s18 + $0x8] sm:$0x1] }
  0x13   : > { %v124_v12 = vmul.bf16 1052065461, %v121_v2 }
  0x14   : > { %141 = vrot.lane.b32.xlu0 %v1241_v3, %s1200_s12  ;;  %v1246_v7 = vcombine.low %v122_v4, %v123_v5 }
  0x15   : > { %v1255_v13 = vcombine.low %v124_v12, %v124_v12 }
  0x16   : > { %1050 = vmatprep.mubr.msk.bf16.mxu0 %vm145_vm0, %v1246_v7 }
  0x18   : > { %143 = vrot.lane.b32.xlu0 %v1244_v6, %s1200_s12 }
  0x86   : > { %v142_v8 = vpop.permute.xlu0 %141 }
  0x87   : > { %1110 = vmatprep.subr.msk.bf16.mxu0 %vm145_vm0, %v142_v8  ;;  %v153_v9 = vsel %vm145_vm0, %v142_v8, 0 }
  0x88   : > { %1047 = vmatpush3.bf16.xpose.msra.mxu0 %v153_v9 }
  0x8a   : > { %v144_v10 = vpop.permute.xlu0 %143 }
  0x8b   : > { %1111 = vmatprep.subr.msk.bf16.mxu0 %vm145_vm0, %v144_v10  ;;  %v156_v11 = vsel %vm145_vm0, %v144_v10, 0 }
  0x90   : > { %1049 = vmatpush3.bf16.xpose.msra.mxu0 %v156_v11 }
  0x97   : > { %1051 = vmatmul.mubr.msk.bf16.vlgmr.msra.gmra.mrb[0].mxu0 %vm145_vm0, %v1255_v13 }
 0x16a   : > { %v1052_v14 = vpop.f32.mrb[0].mxu0 }
 0x16b   : > { %v192_v15 = vpop.f32.mrb[1].mxu0  ;;  %v214_v16 = vsel %vm213_vm1, %v1052_v14, -inf }
 0x16c   : > { %215 = vmax.xlane.f32.xlu0 %v214_v16  ;;  %v1053_v17 = vpop.f32.mrb[2].mxu0  ;;  %v207_v18 = vsel %vm206_vm2, %v192_v15, -inf }
 0x16d   : > { %208 = vmax.xlane.f32.xlu1 %v207_v18  ;;  %v195_v19 = vpop.f32.mrb[3].mxu0 }
 0x16e   : > { %v210_v20 = vsel %vm206_vm2, %v195_v19, -inf }
 0x171   : > { %211 = vmax.xlane.f32.xlu1 %v210_v20 }
 0x182   : > { %243 = vrot.lane.b32.xlu1 %v1241_v3, %s1201_s13  ;;  %334 = vrot.lane.b32.xlu0 %v1241_v3, %s1202_s14 }
 0x1f9   : > { %v216_v21 = vpop.xlane.xlu0 %215 }
 0x1fa   : > { %v219_v22 = vsub.f32 %v1052_v14, %v216_v21  ;;  %v209_v23 = vpop.xlane.xlu1 %208 }
 0x1fb   : > { %v217_v24 = vsub.f32 %v192_v15, %v209_v23 }
 0x1fc   : > { %v224_v25 = vmul.f32 1.442695, %v219_v22 }
 0x1fd   : > { %v220_v26 = vmul.f32 1.442695, %v217_v24  ;;  %v335_v44 = vpop.permute.xlu0 %334 }
 0x1fe   : > { %1144 = vpow2.f32 %v224_v25  ;;  %v212_v27 = vpop.xlane.xlu1 %211  ;;  %v345_v53 = vsel %vm145_vm0, %v335_v44, 0 }
 0x1ff   : > { %v218_v28 = vsub.f32 %v195_v19, %v212_v27  ;;  %1146 = vpow2.f32 %v220_v26 }
 0x201   : > { %v222_v29 = vmul.f32 1.442695, %v218_v28 }
 0x202   : > { %v244_v30 = vpop.permute.xlu1 %243 }
 0x203   : > { %1054 = vmatprep.subr.bf16.mxu1 %v244_v30  ;;  %1148 = vpow2.f32 %v222_v29 }
 0x204   : > { %1055 = vmatpush3.bf16.msra.mxu1 %v244_v30 }
 0x208   : > { %v1145_v31 = vpop.eup %1144 }
 0x209   : > { %v232_v32 = vsel %vm213_vm1, %v1145_v31, 0.0  ;;  %v1147_v33 = vpop.eup %1146 }
 0x20a   : > { %233 = vadd.xlane.f32.xlu1 %v232_v32  ;;  %v226_v34 = vsel %vm206_vm2, %v1147_v33, 0.0 }
 0x20d   : > { %v1149_v35 = vpop.eup %1148 }
 0x20e   : > { %227 = vadd.xlane.f32.xlu1 %v226_v34  ;;  %v229_v36 = vsel %vm206_vm2, %v1149_v35, 0.0 }
 0x212   : > { %230 = vadd.xlane.f32.xlu1 %v229_v36 }
 0x223   : > { %245 = vrot.lane.b32.xlu1 %v1244_v6, %s1201_s13 }
 0x227   : > { %336 = vrot.lane.b32.xlu1 %v1244_v6, %s1202_s14 }
 0x22b   : > { %330 = vrot.lane.b32.xlu1 %v1246_v7, %s1203_s15 }
 0x22f   : > { %332 = vrot.lane.b32.xlu1 %v1255_v13, %s1203_s15 }
 0x297   : > { %v234_v37 = vpop.xlane.xlu1 %233 }
 0x298   : > { %1150 = vrcp.f32 %v234_v37 }
 0x29b   : > { %v228_v38 = vpop.xlane.xlu1 %227 }
 0x29c   : > { %1152 = vrcp.f32 %v228_v38 }
 0x29f   : > { %v231_v39 = vpop.xlane.xlu1 %230 }
 0x2a0   : > { %1154 = vrcp.f32 %v231_v39 }
 0x2a2   : > { %v1151_v45 = vpop.eup %1150 }
 0x2a3   : > { %v246_v42 = vpop.permute.xlu1 %245  ;;  %v240_v49 = vmul.f32 %v1151_v45, %v1145_v31 }
 0x2a4   : > { %v258_v43 = vand.u32 %v1271_v41, %v246_v42 }
 0x2a5   : > { %v242_v54 = vpack.c.bf16 %v240_v49, %v240_v49 }
 0x2a6   : > { %1056 = vmatprep.subr.bf16.mxu1 %v258_v43  ;;  %v1153_v46 = vpop.eup %1152 }
 0x2a7   : > { %1057 = vmatpush3.bf16.msra.mxu1 %v258_v43  ;;  %v337_v47 = vpop.permute.xlu1 %336  ;;  %v238_v50 = vmul.f32 %v1153_v46, %v1147_v33 }
 0x2a8   : > { %1112 = vmatprep.subr.msk.bf16.mxu1 %vm145_vm0, %v335_v44  ;;  %v348_v56 = vsel %vm145_vm0, %v337_v47, 0 }
 0x2aa   : > { %v1155_v48 = vpop.eup %1154 }
 0x2ab   : > { %v239_v51 = vmul.f32 %v1155_v48, %v1149_v35  ;;  %v331_v55 = vpop.permute.xlu1 %330 }
 0x2ad   : > { %v241_v52 = vpack.c.bf16 %v239_v51, %v238_v50 }
 0x2af   : > { %1058 = vmatprep.mubr.msk.bf16.mxu1 %vm206_vm2, %v241_v52  ;;  %v333_v57 = vpop.permute.xlu1 %332 }
 0x2b0   : > { %1059 = vmatmul.mubr.msk.bf16.vlgmr.msra.gmra.mrb[0].mxu1 %vm206_vm2, %v242_v54 }
 0x2b1   : > { %1063 = vmatpush3.bf16.xpose.msra.mxu1 %v345_v53  ;;  %1066 = vmatprep.mubr.msk.bf16.mxu1 %vm145_vm0, %v331_v55 }
 0x2b2   : > { %1113 = vmatprep.subr.msk.bf16.mxu1 %vm145_vm0, %v337_v47 }
 0x2b9   : > { %1065 = vmatpush3.bf16.xpose.msra.mxu1 %v348_v56 }
 0x2c0   : > { %1067 = vmatmul.mubr.msk.bf16.vlgmr.msra.gmra.mrb[4].mxu1 %vm145_vm0, %v333_v57 }
 0x383   : > { %v1060_v58 = vpop.f32.mrb[0].mxu1 }
 0x384   : > { %v1004_v60 = vpack.c.bf16 %v1060_v58, %v1060_v58  ;;  %v294_v61 = vpop.f32.mrb[1].mxu1 }
 0x385   : > { %v1002_v62 = vpack.c.bf16 %v294_v61, %v294_v61  ;;  %v1061_v63 = vpop.f32.mrb[2].mxu1 }
 0x386   : > { %v328_v0 = vsel %vm326_vm6, %v1004_v60, %v327_v59  ;;  %v297_v1 = vpop.f32.mrb[3].mxu1 }
 0x387   : > { %329 = vst [vmem:[%s1287_s18 + $0x8] sm:$0x1] %v328_v0  ;;  %322 = vst.msk [vmem:[%s1287_s18] sm:$0xf] %vm321_vm7, %v1002_v62  ;;  %v1003_v2 = vpack.c.bf16 %v297_v1, %v297_v1 }
 0x389   : > { %323 = vst.msk [vmem:[%s1287_s18 + $0x4] sm:$0xf] %vm321_vm7, %v1003_v2 }
 0x393   : > { %v1068_v4 = vpop.f32.mrb[4].mxu1 }
 0x394   : > { %v384_v5 = vpop.f32.mrb[5].mxu1  ;;  %v404_v12 = vsel %vm213_vm1, %v1068_v4, -inf }
 0x395   : > { %v1069_v8 = vpop.f32.mrb[6].mxu1  ;;  %v398_v9 = vsel %vm206_vm2, %v384_v5, -inf }
 0x396   : > { %399 = vmax.xlane.f32.xlu1 %v398_v9  ;;  %v387_v10 = vpop.f32.mrb[7].mxu1 }
 0x397   : > { %v401_v11 = vsel %vm206_vm2, %v387_v10, -inf }
 0x398   : > { %402 = vmax.xlane.f32.xlu0 %v401_v11 }
 0x39a   : > { %405 = vmax.xlane.f32.xlu1 %v404_v12 }
 0x3ab   : > { %433 = vrot.lane.b32.xlu1 %v1241_v3, %s1205_s19 }
 0x423   : > { %v400_v14 = vpop.xlane.xlu1 %399 }
 0x424   : > { %v407_v16 = vsub.f32 %v384_v5, %v400_v14 }
 0x425   : > { %v403_v15 = vpop.xlane.xlu0 %402 }
 0x426   : > { %v408_v17 = vsub.f32 %v387_v10, %v403_v15  ;;  %v410_v21 = vmul.f32 1.442695, %v407_v16 }
 0x427   : > { %v406_v18 = vpop.xlane.xlu1 %405 }
 0x428   : > { %v412_v19 = vmul.f32 1.442695, %v408_v17  ;;  %v409_v20 = vsub.f32 %v1068_v4, %v406_v18 }
 0x42a   : > { %1156 = vpow2.f32 %v412_v19  ;;  %v414_v22 = vmul.f32 1.442695, %v409_v20 }
 0x42b   : > { %v434_v23 = vpop.permute.xlu1 %433 }
 0x42c   : > { %1158 = vpow2.f32 %v414_v22  ;;  %1070 = vmatprep.subr.bf16.mxu0 %v434_v23 }
 0x42d   : > { %1071 = vmatpush3.bf16.msra.mxu0 %v434_v23  ;;  %1160 = vpow2.f32 %v410_v21 }
 0x434   : > { %v1157_v24 = vpop.eup %1156 }
 0x435   : > { %v419_v25 = vsel %vm206_vm2, %v1157_v24, 0.0 }
 0x436   : > { %v1159_v26 = vpop.eup %1158  ;;  %420 = vadd.xlane.f32.xlu1 %v419_v25 }
 0x437   : > { %v422_v27 = vsel %vm213_vm1, %v1159_v26, 0.0  ;;  %v1161_v28 = vpop.eup %1160 }
 0x438   : > { %423 = vadd.xlane.f32.xlu0 %v422_v27  ;;  %v416_v29 = vsel %vm206_vm2, %v1161_v28, 0.0 }
 0x43c   : > { %417 = vadd.xlane.f32.xlu0 %v416_v29 }
 0x447   : > { %526 = vrot.lane.b32.xlu1 %v1241_v3, %s1206_s20 }
 0x44b   : > { %528 = vrot.lane.b32.xlu1 %v1244_v6, %s1206_s20 }
 0x44f   : > { %524 = vrot.lane.b32.xlu1 %v1255_v13, %s1207_s21 }
 0x452   : > { %435 = vrot.lane.b32.xlu0 %v1244_v6, %s1205_s19 }
 0x456   : > { %522 = vrot.lane.b32.xlu0 %v1246_v7, %s1207_s21 }
 0x4c3   : > { %v421_v30 = vpop.xlane.xlu1 %420 }
 0x4c5   : > { %v424_v31 = vpop.xlane.xlu0 %423 }
 0x4c6   : > { %1162 = vrcp.f32 %v424_v31 }
 0x4c7   : > { %1164 = vrcp.f32 %v421_v30  ;;  %v527_v35 = vpop.permute.xlu1 %526 }
 0x4c8   : > { %v537_v44 = vsel %vm145_vm0, %v527_v35, 0 }
 0x4c9   : > { %v418_v32 = vpop.xlane.xlu0 %417 }
 0x4ca   : > { %1166 = vrcp.f32 %v418_v32 }
 0x4cb   : > { %v529_v47 = vpop.permute.xlu1 %528 }
 0x4cc   : > { %v540_v48 = vsel %vm145_vm0, %v529_v47, 0 }
 0x4cd   : > { %v436_v33 = vpop.permute.xlu0 %435 }
 0x4ce   : > { %v445_v34 = vand.u32 %v436_v33, %v1271_v41 }
 0x4cf   : > { %v525_v49 = vpop.permute.xlu1 %524 }
 0x4d0   : > { %1072 = vmatprep.subr.bf16.mxu0 %v445_v34  ;;  %v1163_v36 = vpop.eup %1162 }
 0x4d1   : > { %1073 = vmatpush3.bf16.msra.mxu0 %v445_v34  ;;  %v1165_v37 = vpop.eup %1164  ;;  %v430_v39 = vmul.f32 %v1163_v36, %v1159_v26  ;;  %v523_v46 = vpop.permute.xlu0 %522 }
 0x4d2   : > { %1114 = vmatprep.subr.msk.bf16.mxu0 %vm145_vm0, %v527_v35  ;;  %v429_v42 = vmul.f32 %v1165_v37, %v1157_v24 }
 0x4d3   : > { %v432_v45 = vpack.c.bf16 %v430_v39, %v430_v39 }
 0x4d4   : > { %v1167_v38 = vpop.eup %1166 }
 0x4d5   : > { %v428_v40 = vmul.f32 %v1167_v38, %v1161_v28 }
 0x4d7   : > { %v431_v43 = vpack.c.bf16 %v429_v42, %v428_v40 }
 0x4d9   : > { %1074 = vmatprep.mubr.msk.bf16.mxu0 %vm206_vm2, %v431_v43 }
 0x4da   : > { %1075 = vmatmul.mubr.msk.bf16.vlgmr.msra.gmra.mrb[4].mxu0 %vm206_vm2, %v432_v45 }
 0x4db   : > { %1079 = vmatpush3.bf16.xpose.msra.mxu0 %v537_v44  ;;  %1082 = vmatprep.mubr.msk.bf16.mxu0 %vm145_vm0, %v523_v46 }
 0x4dc   : > { %1115 = vmatprep.subr.msk.bf16.mxu0 %vm145_vm0, %v529_v47 }
 0x4e3   : > { %1081 = vmatpush3.bf16.xpose.msra.mxu0 %v540_v48 }
 0x4ea   : > { %1083 = vmatmul.mubr.msk.bf16.vlgmr.msra.gmra.mrb[8].mxu0 %vm145_vm0, %v525_v49 }
 0x5ad   : > { %v1317_v50 = vpop.f32.mrb[4].mxu0 }
 0x5ae   : > { %v1319_v51 = vpop.f32.mrb[5].mxu0 }
 0x5af   : > { %v1077_v52 = vpop.f32.mrb[6].mxu0 }
 0x5b0   : > { %v1321_v53 = vpop.f32.mrb[7].mxu0 }
 0x5bd   : > { %v1084_v54 = vpop.f32.mrb[8].mxu0 }
 0x5be   : > { %v576_v55 = vpop.f32.mrb[9].mxu0  ;;  %v596_v60 = vsel %vm213_vm1, %v1084_v54, -inf }
 0x5bf   : > { %v1085_v56 = vpop.f32.mrb[10].mxu0  ;;  %v590_v57 = vsel %vm206_vm2, %v576_v55, -inf }
 0x5c0   : > { %591 = vmax.xlane.f32.xlu0 %v590_v57  ;;  %v579_v58 = vpop.f32.mrb[11].mxu0 }
 0x5c1   : > { %v593_v59 = vsel %vm206_vm2, %v579_v58, -inf }
 0x5c2   : > { %594 = vmax.xlane.f32.xlu1 %v593_v59 }
 0x5c4   : > { %597 = vmax.xlane.f32.xlu0 %v596_v60 }
 0x5d3   : > { %625 = vrot.lane.b32.xlu1 %v1241_v3, %s1208_s22 }
 0x64d   : > { %v592_v61 = vpop.xlane.xlu0 %591 }
 0x64e   : > { %v599_v63 = vsub.f32 %v576_v55, %v592_v61 }
 0x64f   : > { %v595_v62 = vpop.xlane.xlu1 %594 }
 0x650   : > { %v600_v0 = vsub.f32 %v579_v58, %v595_v62  ;;  %v602_v8 = vmul.f32 1.442695, %v599_v63 }
 0x651   : > { %v598_v1 = vpop.xlane.xlu0 %597 }
 0x652   : > { %v604_v2 = vmul.f32 1.442695, %v600_v0  ;;  %v601_v4 = vsub.f32 %v1084_v54, %v598_v1  ;;  %v1007_v0 = vpack.c.bf16 %v1317_v50, %v1317_v50 }
 0x653   : > { %v626_v5 = vpop.permute.xlu1 %625 }
 0x654   : > { %1168 = vpow2.f32 %v604_v2  ;;  %v606_v9 = vmul.f32 1.442695, %v601_v4  ;;  %1086 = vmatprep.subr.bf16.mxu1 %v626_v5  ;;  %v1006_v2 = vpack.c.bf16 %v1321_v53, %v1321_v53  ;;  %v1005_v4 = vpack.c.bf16 %v1319_v51, %v1319_v51 }
 0x655   : > { %1087 = vmatpush3.bf16.msra.mxu1 %v626_v5 }
 0x656   : > { %1170 = vpow2.f32 %v606_v9 }
 0x657   : > { %1172 = vpow2.f32 %v602_v8 }
 0x65e   : > { %v1169_v10 = vpop.eup %1168 }
 0x65f   : > { %v611_v11 = vsel %vm206_vm2, %v1169_v10, 0.0 }
 0x660   : > { %v1171_v12 = vpop.eup %1170  ;;  %612 = vadd.xlane.f32.xlu1 %v611_v11 }
 0x661   : > { %v614_v14 = vsel %vm213_vm1, %v1171_v12, 0.0  ;;  %v1173_v15 = vpop.eup %1172 }
 0x662   : > { %615 = vadd.xlane.f32.xlu0 %v614_v14  ;;  %v608_v16 = vsel %vm206_vm2, %v1173_v15, 0.0 }
 0x666   : > { %609 = vadd.xlane.f32.xlu0 %v608_v16 }
 0x671   : > { %718 = vrot.lane.b32.xlu1 %v1241_v3, %s1209_s23 }
 0x675   : > { %720 = vrot.lane.b32.xlu1 %v1244_v6, %s1209_s23 }
 0x679   : > { %716 = vrot.lane.b32.xlu1 %v1255_v13, %s1210_s24 }
 0x67c   : > { %627 = vrot.lane.b32.xlu0 %v1244_v6, %s1208_s22 }
 0x680   : > { %714 = vrot.lane.b32.xlu0 %v1246_v7, %s1210_s24 }
 0x6ed   : > { %v613_v17 = vpop.xlane.xlu1 %612 }
 0x6ef   : > { %v616_v18 = vpop.xlane.xlu0 %615 }
 0x6f0   : > { %1174 = vrcp.f32 %v616_v18 }
 0x6f1   : > { %1176 = vrcp.f32 %v613_v17  ;;  %v719_v22 = vpop.permute.xlu1 %718 }
 0x6f2   : > { %v729_v28 = vsel %vm145_vm0, %v719_v22, 0 }
 0x6f3   : > { %v610_v19 = vpop.xlane.xlu0 %609 }
 0x6f4   : > { %1178 = vrcp.f32 %v610_v19 }
 0x6f5   : > { %v721_v31 = vpop.permute.xlu1 %720 }
 0x6f6   : > { %v732_v32 = vsel %vm145_vm0, %v721_v31, 0 }
 0x6f7   : > { %v628_v20 = vpop.permute.xlu0 %627 }
 0x6f8   : > { %v637_v21 = vand.u32 %v628_v20, %v1271_v41 }
 0x6f9   : > { %v717_v33 = vpop.permute.xlu1 %716 }
 0x6fa   : > { %1088 = vmatprep.subr.bf16.mxu1 %v637_v21  ;;  %v1175_v23 = vpop.eup %1174 }
 0x6fb   : > { %1089 = vmatpush3.bf16.msra.mxu1 %v637_v21  ;;  %v1177_v24 = vpop.eup %1176  ;;  %v622_v25 = vmul.f32 %v1175_v23, %v1171_v12  ;;  %v715_v30 = vpop.permute.xlu0 %714 }
 0x6fc   : > { %1116 = vmatprep.subr.msk.bf16.mxu1 %vm145_vm0, %v719_v22  ;;  %v621_v7 = vmul.f32 %v1177_v24, %v1169_v10 }
 0x6fd   : > { %v624_v29 = vpack.c.bf16 %v622_v25, %v622_v25 }
 0x6fe   : > { %v1179_v13 = vpop.eup %1178 }
 0x6ff   : > { %v620_v26 = vmul.f32 %v1179_v13, %v1173_v15 }
 0x701   : > { %v623_v27 = vpack.c.bf16 %v621_v7, %v620_v26 }
 0x703   : > { %1090 = vmatprep.mubr.msk.bf16.mxu1 %vm206_vm2, %v623_v27 }
 0x704   : > { %1091 = vmatmul.mubr.msk.bf16.vlgmr.msra.gmra.mrb[8].mxu1 %vm206_vm2, %v624_v29 }
 0x705   : > { %1095 = vmatpush3.bf16.xpose.msra.mxu1 %v729_v28  ;;  %1098 = vmatprep.mubr.msk.bf16.mxu1 %vm145_vm0, %v715_v30 }
 0x706   : > { %1117 = vmatprep.subr.msk.bf16.mxu1 %vm145_vm0, %v721_v31 }
 0x70d   : > { %1097 = vmatpush3.bf16.xpose.msra.mxu1 %v732_v32 }
 0x714   : > { %1099 = vmatmul.mubr.msk.bf16.vlgmr.msra.gmra.mrb[12].mxu1 %vm145_vm0, %v717_v33  ;;  %vm898_vm0 = vcmask 257216  }
 0x7d7   : > { %v1092_v34 = vpop.f32.mrb[8].mxu1 }
 0x7d8   : > { %v673_v35 = vpop.f32.mrb[9].mxu1  ;;  %v1010_v1 = vpack.c.bf16 %v1092_v34, %v1092_v34 }
 0x7d9   : > { %v1093_v36 = vpop.f32.mrb[10].mxu1 }
 0x7da   : > { %v676_v37 = vpop.f32.mrb[11].mxu1 }
 0x7db   : > { %v1009_v5 = vpack.c.bf16 %v676_v37, %v676_v37 }
 0x7e7   : > { %v1100_v38 = vpop.f32.mrb[12].mxu1 }
 0x7e8   : > { %v768_v39 = vpop.f32.mrb[13].mxu1  ;;  %v788_v45 = vsel %vm213_vm1, %v1100_v38, -inf }
 0x7e9   : > { %v1101_v40 = vpop.f32.mrb[14].mxu1  ;;  %v782_v42 = vsel %vm206_vm2, %v768_v39, -inf }
 0x7ea   : > { %783 = vmax.xlane.f32.xlu0 %v782_v42  ;;  %v771_v43 = vpop.f32.mrb[15].mxu1 }
 0x7eb   : > { %v785_v44 = vsel %vm206_vm2, %v771_v43, -inf }
 0x7ec   : > { %786 = vmax.xlane.f32.xlu1 %v785_v44 }
 0x7ee   : > { %789 = vmax.xlane.f32.xlu0 %v788_v45 }
 0x877   : > { %v784_v46 = vpop.xlane.xlu0 %783 }
 0x878   : > { %v791_v48 = vsub.f32 %v768_v39, %v784_v46 }
 0x879   : > { %v787_v47 = vpop.xlane.xlu1 %786 }
 0x87a   : > { %v792_v49 = vsub.f32 %v771_v43, %v787_v47  ;;  %v794_v56 = vmul.f32 1.442695, %v791_v48 }
 0x87b   : > { %v790_v52 = vpop.xlane.xlu0 %789 }
 0x87c   : > { %v796_v54 = vmul.f32 1.442695, %v792_v49  ;;  %v793_v55 = vsub.f32 %v1100_v38, %v790_v52 }
 0x87e   : > { %1180 = vpow2.f32 %v796_v54  ;;  %v798_v57 = vmul.f32 1.442695, %v793_v55 }
 0x880   : > { %1182 = vpow2.f32 %v798_v57 }
 0x881   : > { %1184 = vpow2.f32 %v794_v56 }
 0x888   : > { %v1181_v58 = vpop.eup %1180 }
 0x889   : > { %v803_v59 = vsel %vm206_vm2, %v1181_v58, 0.0 }
 0x88a   : > { %v1183_v60 = vpop.eup %1182  ;;  %804 = vadd.xlane.f32.xlu1 %v803_v59 }
 0x88b   : > { %v806_v61 = vsel %vm213_vm1, %v1183_v60, 0.0  ;;  %v1185_v62 = vpop.eup %1184 }
 0x88c   : > { %807 = vadd.xlane.f32.xlu0 %v806_v61  ;;  %v800_v63 = vsel %vm206_vm2, %v1185_v62, 0.0 }
 0x890   : > { %801 = vadd.xlane.f32.xlu0 %v800_v63 }
 0x89b   : > { %817 = vrot.lane.b32.xlu1 %v1241_v3, %s1211_s25  ;;  %v1008_v3 = vpack.c.bf16 %v673_v35, %v673_v35 }
 0x89f   : > { %509 = vrot.lane.b32.xlu1 %v1007_v0, %s1212_s26 }
 0x8a3   : > { %701 = vrot.lane.b32.xlu1 %v1010_v1, %s1213_s27 }
 0x8a6   : > { %819 = vrot.lane.b32.xlu0 %v1244_v6, %s1211_s25  ;;  %v519_v6 = vld [vmem:[%s1287_s18 + $0x8] sm:$0x1] }
 0x8a7   : > { %507 = vrot.lane.b32.xlu1 %v1006_v2, %s1212_s26 }
 0x8aa   : > { %505 = vrot.lane.b32.xlu0 %v1005_v4, %s1212_s26 }
 0x8ab   : > { %699 = vrot.lane.b32.xlu1 %v1009_v5, %s1213_s27 }
 0x8ae   : > { %697 = vrot.lane.b32.xlu0 %v1008_v3, %s1213_s27 }
 0x917   : > { %v805_v50 = vpop.xlane.xlu1 %804 }
 0x919   : > { %v808_v8 = vpop.xlane.xlu0 %807 }
 0x91a   : > { %1186 = vrcp.f32 %v808_v8 }
 0x91b   : > { %v818_v9 = vpop.permute.xlu1 %817  ;;  %1188 = vrcp.f32 %v805_v50 }
 0x91c   : > { %1102 = vmatprep.subr.bf16.mxu0 %v818_v9 }
 0x91d   : > { %v802_v53 = vpop.xlane.xlu0 %801  ;;  %1103 = vmatpush3.bf16.msra.mxu0 %v818_v9 }
 0x91e   : > { %1190 = vrcp.f32 %v802_v53 }
 0x91f   : > { %v510_v51 = vpop.permute.xlu1 %509 }
 0x920   : > { %v520_v10 = vsel %vm518_vm9, %v510_v51, %v519_v6 }
 0x921   : > { %521 = vst [vmem:[%s1287_s18 + $0x8] sm:$0x1] %v520_v10  ;;  %v820_v11 = vpop.permute.xlu0 %819 }
 0x922   : > { %v829_v12 = vand.u32 %v820_v11, %v1271_v41 }
 0x923   : > { %v702_v14 = vpop.permute.xlu1 %701 }
 0x924   : > { %1104 = vmatprep.subr.bf16.mxu0 %v829_v12  ;;  %v1187_v15 = vpop.eup %1186 }
 0x925   : > { %v506_v16 = vpop.permute.xlu0 %505  ;;  %1105 = vmatpush3.bf16.msra.mxu0 %v829_v12  ;;  %v1189_v17 = vpop.eup %1188  ;;  %v814_v20 = vmul.f32 %v1187_v15, %v1183_v60 }
 0x926   : > { %515 = vst.msk [vmem:[%s1287_s18] sm:$0xf] %vm514_vm11, %v506_v16  ;;  %v813_v24 = vmul.f32 %v1189_v17, %v1181_v58 }
 0x927   : > { %v508_v18 = vpop.permute.xlu1 %507  ;;  %v816_v26 = vpack.c.bf16 %v814_v20, %v814_v20 }
 0x928   : > { %v1191_v19 = vpop.eup %1190  ;;  %v711_v41 = vld [vmem:[%s1287_s18 + $0x8] sm:$0x1]  ;;  %516 = vst.msk [vmem:[%s1287_s18 + $0x4] sm:$0xf] %vm514_vm11, %v508_v18 }
 0x929   : > { %v712_v21 = vsel %vm710_vm12, %v702_v14, %v711_v41  ;;  %v698_v22 = vpop.permute.xlu0 %697  ;;  %v812_v23 = vmul.f32 %v1191_v19, %v1185_v62 }
 0x92a   : > { %713 = vst [vmem:[%s1287_s18 + $0x8] sm:$0x1] %v712_v21  ;;  %707 = vst.msk [vmem:[%s1287_s18] sm:$0xf] %vm706_vm13, %v698_v22 }
 0x92b   : > { %v700_v13 = vpop.permute.xlu1 %699  ;;  %v815_v25 = vpack.c.bf16 %v813_v24, %v812_v23 }
 0x92c   : > { %708 = vst.msk [vmem:[%s1287_s18 + $0x4] sm:$0xf] %vm706_vm13, %v700_v13 }
 0x92d   : > { %1106 = vmatprep.mubr.msk.bf16.mxu0 %vm206_vm2, %v815_v25 }
 0x92e   : > { %1107 = vmatmul.mubr.msk.bf16.vlgmr.msra.gmra.mrb[12].mxu0 %vm206_vm2, %v816_v26 }
 0x931   : > { %v903_v34 = vld [vmem:[%s1287_s18 + $0x8] sm:$0x1] }
 0xa01   : > { %v1108_v7 = vpop.f32.mrb[12].mxu0 }
 0xa02   : > { %v1013_v27 = vpack.c.bf16 %v1108_v7, %v1108_v7  ;;  %v865_v28 = vpop.f32.mrb[13].mxu0 }
 0xa03   : > { %v1011_v29 = vpack.c.bf16 %v865_v28, %v865_v28  ;;  %v1109_v30 = vpop.f32.mrb[14].mxu0 }
 0xa04   : > { %893 = vrot.lane.b32.xlu0 %v1013_v27, %s1214_s28  ;;  %v868_v31 = vpop.f32.mrb[15].mxu0 }
 0xa05   : > { %v1012_v32 = vpack.c.bf16 %v868_v31, %v868_v31  ;;  %889 = vrot.lane.b32.xlu1 %v1011_v29, %s1214_s28 }
 0xa08   : > { %891 = vrot.lane.b32.xlu0 %v1012_v32, %s1214_s28 }
 0xa76   : > { %v894_v33 = vpop.permute.xlu0 %893 }
 0xa77   : > { %v904_v35 = vsel %vm902_vm15, %v894_v33, %v903_v34  ;;  %v890_v36 = vpop.permute.xlu1 %889 }
 0xa78   : > { %905 = vst [vmem:[%s1287_s18 + $0x8] sm:$0x1] %v904_v35  ;;  %899 = vst.msk [vmem:[%s1287_s18] sm:$0xf] %vm898_vm0, %v890_v36 }
 0xa7a   : > { %v892_v37 = vpop.permute.xlu0 %891 }
 0xa7b   : > { %900 = vst.msk [vmem:[%s1287_s18 + $0x4] sm:$0xf] %vm898_vm0, %v892_v37 }
 0xa7c PF: > { %s11_s6 = sadd.s32 1, %s1198_s6  }
 0xa7d   : > { %p8_p4 = scmp.ge.s32.totalorder %s11_s6, 4  }
 0xa7f   :  { %10 = sbr.rel (!%p8_p4) target bundleno = 1 (0x1), region = 54 }

// kernel: fwd.17
= control target key start
LH: loop header
LB: loop body
LE: loop exit
PB: predicated region body
PF: predicated region fallthrough
CT: control target
= control target key end

     0   :  { %v265_v0 = vmov 0.0   ;;  %vm266_vm0 = vmmov 0   ;;  %vm68_vm1 = vcmask 523264   ;;  %v151_v8 = vlaneseq  ;;  %s343_s1 = inlined_call_operand.vmem [shape: bf16[64,32], index: 1, kind: input, shape index: {}]   ;;  %s344_s0 = inlined_call_operand.vmem [shape: bf16[34,64], index: 0, kind: input, shape index: {}]   ;;  %s345_s2 = inlined_call_operand.vmem [shape: bf16[1,32], index: 2, kind: input, shape index: {}]   ;;  %s346_s3 = inlined_call_operand.vmem [shape: bf16[34,32], index: 3, kind: input, shape index: {}, may-alias: {3,4}]   ;;  %s347_s4 = inlined_call_operand.vmem [shape: bf16[34,32], index: 4, kind: output, shape index: {}, may-alias: {3,4}]  }
   0x1   :  { %248 = vmatprep.subr.bf16.mxu1 %v265_v0  ;;  %v258_v1 = vld [vmem:[%s343_s1] sm:$0xff]   ;;  %228 = vmatprep.subr.bf16.mxu0 %v265_v0  ;;  %v259_v2 = vld [vmem:[%s343_s1 + $0x8] sm:$0xff]   ;;  %v260_v3 = vld [vmem:[%s343_s1 + $0x10] sm:$0xff]   ;;  %vm181_vm2 = vcmask 257024   ;;  %vm186_vm3 = vcmask 253952  }
   0x2   :  { %240 = vmatprep.mubr.msk.bf16.mxu1 %vm266_vm0, %v265_v0  ;;  %236 = vmatprep.mubr.msk.bf16.mxu0 %vm266_vm0, %v265_v0  ;;  %v261_v4 = vld [vmem:[%s343_s1 + $0x18] sm:$0xff]   ;;  %v262_v5 = vld [vmem:[%s344_s0 + $0x8] sm:$0xff]   ;;  %v263_v6 = vld [vmem:[%s344_s0] sm:$0xff]   ;;  %v152_v9 = vshrl.u32 %v151_v8, 7 }
   0x3   :  { %252 = vmatpush3.bf16.msra.mxu1 %v258_v1  ;;  %229 = vmatpush3.bf16.msra.mxu0 %v258_v1  ;;  %v264_v7 = vld [vmem:[%s344_s0 + $0x10] ss:$0 sps:$4 sm:$0x11]   ;;  %v149_v10 = vld [vmem:[%s345_s2] sm:$0x1]  ;;  %v220_v11 = vld [vmem:[%s346_s3 + $0x8] sm:$0xff]  }
   0x4   :  { %249 = vmatprep.subr.bf16.mxu1 %v265_v0  ;;  %230 = vmatprep.subr.bf16.mxu0 %v265_v0  ;;  %v213_v12 = vld [vmem:[%s346_s3] sm:$0xff]   ;;  %v150_v13 = vunpack.c.l.bf16 %v149_v10  ;;  %v153_v14 = vsub.s32 0, %v152_v9  ;;  %v218_v15 = vunpack.c.l.bf16 %v220_v11  ;;  %v219_v18 = vunpack.c.h.bf16 %v220_v11  ;;  %v138_v26 = vld [vmem:[%s346_s3 + $0x10] sm:$0x1] }
   0x5   :  { %v214_v16 = vunpack.c.l.bf16 %v213_v12  ;;  %v215_v19 = vunpack.c.h.bf16 %v213_v12  ;;  %v143_v35 = vunpack.c.l.bf16 %v138_v26 }
   0x6   :  { %v154_v17 = vrot.slane %v150_v13, %v153_v14 }
   0x7   :  { %253 = vmatpush3.bf16.msra.mxu1 %v259_v2  ;;  %231 = vmatpush3.bf16.msra.mxu0 %v259_v2 }
   0x8   :  { %250 = vmatprep.subr.bf16.mxu1 %v265_v0  ;;  %232 = vmatprep.subr.bf16.mxu0 %v265_v0 }
   0xb   :  { %254 = vmatpush3.bf16.msra.mxu1 %v260_v3  ;;  %233 = vmatpush3.bf16.msra.mxu0 %v260_v3 }
   0xc   :  { %251 = vmatprep.subr.bf16.mxu1 %v265_v0  ;;  %234 = vmatprep.subr.bf16.mxu0 %v265_v0 }
   0xf   :  { %255 = vmatpush3.bf16.msra.mxu1 %v261_v4  ;;  %235 = vmatpush3.bf16.msra.mxu0 %v261_v4 }
  0x12   :  { %241 = vmatmul.mubr.msk.bf16.vlgmr.msra.gmra.mrb[0].mxu1 %vm68_vm1, %v262_v5  ;;  %237 = vmatmul.mubr.msk.bf16.vlgmr.msra.gmra.mrb[0].mxu0 %vm68_vm1, %v263_v6 }
  0x13   :  { %244 = vmatprep.mubr.msk.bf16.mxu1 %vm266_vm0, %v265_v0 }
  0x1a   :  { %245 = vmatmul.mubr.msk.bf16.gmra.mrb[4].mxu1 %vm68_vm1, %v264_v7 }
  0xe5   :  { %v120_v20 = vpop.f32.mrb[0].mxu1  ;;  %v112_v21 = vpop.f32.mrb[0].mxu0 }
  0xe6   :  { %v146_v22 = vadd.f32 %v218_v15, %v120_v20  ;;  %v242_v23 = vpop.f32.mrb[1].mxu1  ;;  %v144_v24 = vadd.f32 %v214_v16, %v112_v21  ;;  %v238_v25 = vpop.f32.mrb[1].mxu0 }
  0xe7   :  { %v123_v27 = vpop.f32.mrb[2].mxu1  ;;  %v115_v28 = vpop.f32.mrb[2].mxu0 }
  0xe8   :  { %v157_v29 = vadd.f32 %v154_v17, %v146_v22  ;;  %v147_v30 = vadd.f32 %v219_v18, %v123_v27  ;;  %v155_v31 = vadd.f32 %v154_v17, %v144_v24  ;;  %v243_v32 = vpop.f32.mrb[3].mxu1  ;;  %v145_v33 = vadd.f32 %v215_v19, %v115_v28  ;;  %v239_v34 = vpop.f32.mrb[3].mxu0 }
  0xea   :  { %v209_v36 = vpack.c.bf16 %v157_v29, %v157_v29  ;;  %v158_v37 = vadd.f32 %v154_v17, %v147_v30  ;;  %v207_v38 = vpack.c.bf16 %v155_v31, %v155_v31  ;;  %v156_v39 = vadd.f32 %v154_v17, %v145_v33 }
  0xec   :  { %184 = vst.msk [vmem:[%s347_s4 + $0x8] sm:$0xf] %vm181_vm2, %v209_v36  ;;  %v210_v40 = vpack.c.bf16 %v158_v37, %v158_v37  ;;  %182 = vst.msk [vmem:[%s347_s4] sm:$0xf] %vm181_vm2, %v207_v38  ;;  %v208_v41 = vpack.c.bf16 %v156_v39, %v156_v39 }
  0xed   :  { %v128_v42 = vpop.f32.mrb[4].mxu1 }
  0xee   :  { %185 = vst.msk [vmem:[%s347_s4 + $0xc] sm:$0xf] %vm181_vm2, %v210_v40  ;;  %183 = vst.msk [vmem:[%s347_s4 + $0x4] sm:$0xf] %vm181_vm2, %v208_v41  ;;  %v148_v43 = vadd.f32 %v143_v35, %v128_v42  ;;  %v246_v44 = vpop.f32.mrb[5].mxu1 }
  0xef   :  { %v131_v45 = vpop.f32.mrb[6].mxu1 }
  0xf0   :  { %v159_v46 = vadd.f32 %v154_v17, %v148_v43  ;;  %v247_v47 = vpop.f32.mrb[7].mxu1 }
  0xf2   :  { %v211_v48 = vpack.c.bf16 %v159_v46, %v159_v46 }
  0xf4   :  { %187 = vst.msk [vmem:[%s347_s4 + $0x10] sm:$0x1] %vm186_vm3, %v211_v48 }

// kernel: fwd.23
= control target key start
LH: loop header
LB: loop body
LE: loop exit
PB: predicated region body
PF: predicated region fallthrough
CT: control target
= control target key end

     0   :  { %8 = vsyncpa [#allocation3], 0  ;;  %s599_s0 = inlined_call_operand.vmem [shape: bf16[2,17,32], index: 0, kind: input, shape index: {}]   ;;  %s600_s1 = inlined_call_operand.vmem [shape: f32[1,32], index: 1, kind: input, shape index: {}]   ;;  %s601_s2 = inlined_call_operand.vmem [shape: f32[1,32], index: 2, kind: input, shape index: {}]   ;;  %s602_s3 = inlined_call_operand.hbm [shape: f32[2,1,64], index: 3, kind: output, shape index: {}]  }
   0x1   :  { %10 = vsyncpa [#allocation3 + $0x1], 0  ;;  %s480_s12 = smov 0   ;;  %s482_s13 = smov 0  }
   0x2   :  { %s484_s14 = smov 0   ;;  %s486_s15 = smov 0  }
   0x3 LB: > { %s501_s16 = sadd.s32 4294967295, %s456_s15   ;;  %s333_s17 = sadd.s32 4294967294, %s456_s15   ;;  %s456_s15 = sphi %s486_s15, %s608_s15   ;;  %s452_s14 = sphi %s484_s14, %s607_s14   ;;  %s448_s13 = sphi %s482_s13, %s606_s13   ;;  %s444_s12 = sphi %s480_s12, %s605_s12  }
   0x4   : > { %s505_s18 = sadd.s32 1, %s456_s15   ;;  %s91_s19 = sadd.s32 1, %s452_s14 }
   0x5   : > { %s88_s20 = ssub.s32 %s456_s15, %s505_s18  ;;  %p101_p0 = scmp.ne.s32.totalorder %s452_s14, %s448_s13 }
   0x6   : > { %p89_p1 = scmp.eq.s32.totalorder %s88_s20, 0  ;;  %p102_p2 = scmp.eq.s32.totalorder %s501_s16, 1 }
   0x7   : > { %p107_p3 = scmp.ne.s32.totalorder %s448_s13, %s444_s12  ;;  %p108_p4 = scmp.eq.s32.totalorder %s333_s17, 1 }
   0x8   : > { %s516_s21 = scalar_select %p89_p1, %s452_s14, %s91_s19  }
   0x9   : > { %p518_p5 = por %p102_p2, %p101_p0  ;;  %p522_p6 = por %p108_p4, %p107_p3 }
   0xa   : > { %p336_p7 = scmp.ge.s32.totalorder %s456_s15, 1  ;;  %p140_p8 = scmp.lt.s32.totalorder %s456_s15, 3 }
   0xc   : > { %p141_p9 = pnand %p336_p7, %p140_p8 }
   0xd   : > { %p163_p10 = scmp.lt.s32.totalorder (!%p141_p9), %s501_s16, 1  ;;  %vm174_vm0 = vcmask (!%p141_p9), 261120   ;;  %vm181_vm1 = vcmask (!%p141_p9), 253952   ;;  %v338_v33 = vld [vmem:[%s600_s1] ss:$0 sm:$0xff] (!%p141_p9)  ;;  %s161_s4 = sand.u32 (!%p141_p9), 1, %s448_s13  }
   0xe   : > { %144 = sbr.rel (%p141_p9) target bundleno = 496 (0x1f0), region = 32  ;;  %v339_v35 = vld [vmem:[%s601_s2] ss:$0 sm:$0xff] (!%p141_p9)  ;;  %s162_s7 = scalar_lea.vmem (!%p141_p9), [#allocation2], %s161_s4  ;;  %vm240_vm2 = vcmask (!%p141_p9), 1046528   ;;  %vm263_vm3 = vcmask (!%p141_p9), 516352  }
   0xf   : > { %s458_s8 = smov (!%p141_p9), 32   ;;  %s340_s9 = sshll.u32 (!%p141_p9), %s501_s16, 4 }
  0x10   : > { %s278_s10 = sshll.u32 (!%p141_p9), %s162_s7, 4  ;;  %s555_s19 = scalar_lea.hbm (!%p141_p9), %s602_s3, %s340_s9  ;;  %s557_s10 = int_to_ptr.vmem [resolvable:$true] %s278_s10 }
  0x11   : > { %s266_s20 = scalar_lea.sflag (!%p141_p9), [#allocation3], %s161_s4 }
  0x15   : > { %s164_s24 = scalar_select %p163_p10, %s501_s16, 1 }
  0x16   : > { %s459_s16 = smov [#allocation2]  }
  0x17   : > { %s347_s25 = smul.u32 12, %s164_s24  ;;  %s394_s24 = scalar_lea.vmem %s557_s10, 16 }
  0x18   : > { %p395_p11 = scmp.ne.s32.totalorder %s557_s10, %s394_s24 }
  0x19   : > { %s167_s28 = scalar_lea.vmem %s599_s0, %s347_s25  ;;  %s398_s25 = sshll.u32 %s459_s16, 4  ;;  %s399_s25 = int_to_ptr.vmem [resolvable:$false] %s398_s25 }
  0x1a   : > { %v344_v0 = vld [vmem:[%s167_s28] sm:$0xff]   ;;  %v170_v1 = vld [vmem:[%s167_s28 + $0x8] sm:$0x1]  ;;  %p396_p12 = pnand %p395_p11, %p518_p5  ;;  %s400_s26 = scalar_lea.vmem %s399_s25, 32 }
  0x1b   : > { %v345_v2 = vunpack.c.l.bf16 %v344_v0  ;;  %v173_v3 = vunpack.c.l.bf16 %v170_v1  ;;  %v346_v4 = vunpack.c.h.bf16 %v344_v0  ;;  %p401_p0 = scmp.lt.s32.totalorder %s557_s10, %s399_s25  ;;  %p402_p1 = scmp.lt.s32.totalorder %s400_s26, %s394_s24 }
  0x1c   : > { %p397_p13 = pneg %p396_p12 }
  0x1d   : > { %v175_v5 = vsel %vm174_vm0, %v345_v2, 0.0  ;;  %v182_v6 = vsel %vm181_vm1, %v173_v3, 0.0  ;;  %v178_v7 = vsel %vm174_vm0, %v346_v4, 0.0  ;;  %p403_p2 = por %p402_p1, %p401_p0 }
  0x1e   : > { %176 = vadd.xlane.f32.xlu0 %v175_v5  ;;  %183 = vadd.xlane.f32.xlu1 %v182_v6 }
  0x1f   : > { %p404_p3 = pnand %p403_p2, %p397_p13 }
  0x22   : > { %179 = vadd.xlane.f32.xlu0 %v178_v7 }
  0xab   : > { %v177_v8 = vpop.xlane.xlu0 %176  ;;  %v184_v9 = vpop.xlane.xlu1 %183 }
  0xac   : > { %v186_v10 = vmul.f32 0.03125, %v177_v8  ;;  %v188_v11 = vmul.f32 0.03125, %v184_v9 }
  0xae   : > { %v189_v12 = vsub.f32 %v345_v2, %v186_v10  ;;  %v191_v13 = vsub.f32 %v173_v3, %v188_v11 }
  0xaf   : > { %v180_v14 = vpop.xlane.xlu0 %179 }
  0xb0   : > { %v187_v15 = vmul.f32 0.03125, %v180_v14  ;;  %v192_v16 = vmul.f32 %v189_v12, %v189_v12  ;;  %v194_v17 = vmul.f32 %v191_v13, %v191_v13 }
  0xb2   : > { %v190_v18 = vsub.f32 %v346_v4, %v187_v15  ;;  %v195_v19 = vsel %vm174_vm0, %v192_v16, 0.0  ;;  %v201_v20 = vsel %vm181_vm1, %v194_v17, 0.0 }
  0xb3   : > { %196 = vadd.xlane.f32.xlu1 %v195_v19 }
  0xb4   : > { %v193_v21 = vmul.f32 %v190_v18, %v190_v18 }
  0xb6   : > { %v198_v22 = vsel %vm174_vm0, %v193_v21, 0.0 }
  0xb7   : > { %202 = vadd.xlane.f32.xlu1 %v201_v20  ;;  %199 = vadd.xlane.f32.xlu0 %v198_v22 }
 0x140   : > { %v197_v23 = vpop.xlane.xlu1 %196 }
 0x141   : > { %v204_v24 = vmul.f32 0.03125, %v197_v23 }
 0x143   : > { %v207_v25 = vadd.f32 1e-06, %v204_v24 }
 0x144   : > { %v203_v26 = vpop.xlane.xlu1 %202  ;;  %v200_v27 = vpop.xlane.xlu0 %199 }
 0x145   : > { %388 = vrsqrt.f32 %v207_v25  ;;  %v206_v28 = vmul.f32 0.03125, %v203_v26  ;;  %v205_v29 = vmul.f32 0.03125, %v200_v27 }
 0x147   : > { %v209_v30 = vadd.f32 1e-06, %v206_v28  ;;  %v208_v31 = vadd.f32 1e-06, %v205_v29 }
 0x149   : > { %390 = vrsqrt.f32 %v209_v30 }
 0x14a   : > { %392 = vrsqrt.f32 %v208_v31 }
 0x14f   : > { %v389_v32 = vpop.eup %388 }
 0x150   : > { %v213_v34 = vmul.f32 %v389_v32, %v189_v12 }
 0x152   : > { %v223_v36 = vmul.f32 %v338_v33, %v213_v34 }
 0x153   : > { %v391_v37 = vpop.eup %390 }
 0x154   : > { %v393_v38 = vpop.eup %392  ;;  %v233_v39 = vadd.f32 %v339_v35, %v223_v36  ;;  %v215_v40 = vmul.f32 %v391_v37, %v191_v13 }
 0x155   : > { %v214_v41 = vmul.f32 %v393_v38, %v190_v18 }
 0x156   : > { %v225_v42 = vmul.f32 %v338_v33, %v215_v40  ;;  %236 = vst.msk [vmem:[%s162_s7] sm:$0x1] %vm181_vm1, %v233_v39  ;;  %v241_v47 = vrot.slane %v233_v39, 1 }
 0x157   : > { %v224_v43 = vmul.f32 %v338_v33, %v214_v41 }
 0x158   : > { %v235_v44 = vadd.f32 %v339_v35, %v225_v42 }
 0x159   : > { %v234_v45 = vadd.f32 %v339_v35, %v224_v43 }
 0x15a   : > { %v244_v46 = vrot.slane %v235_v44, 1 }
 0x15b   : > { %v242_v48 = vrot.slane %v234_v45, 1 }
 0x15d   : > { %v243_v49 = vsel %vm240_vm2, %v241_v47, %v242_v48  ;;  %v245_v50 = vsel %vm240_vm2, %v242_v48, %v244_v46 }
 0x15e   : > { %v248_v51 = vsel %vm174_vm0, %v243_v49, 0.0  ;;  %v249_v52 = vsel %vm174_vm0, %v245_v50, 0.0 }
 0x15f   : > { %v250_v53 = vadd.f32 %v249_v52, %v248_v51 }
 0x161   : > { %v251_v54 = vrot.slane %v250_v53, 4 }
 0x163   : > { %v252_v55 = vadd.f32 %v251_v54, %v250_v53 }
 0x165   : > { %v253_v56 = vrot.slane %v252_v55, 2 }
 0x167   : > { %v254_v57 = vadd.f32 %v253_v56, %v252_v55 }
 0x169   : > { %v255_v58 = vrot.slane %v254_v57, 1 }
 0x16b   : > { %v256_v59 = vadd.f32 %v255_v58, %v254_v57 }
 0x16d   : > { %v258_v60 = vmul.f32 0.0625, %v256_v59 }
 0x16f   : > { %260 = vrot.lane.b32.xlu0 %v258_v60, %s458_s8 }
 0x1e1   : > { %v261_v61 = vpop.permute.xlu0 %260 }
 0x1e2   : > { %264 = vst.msk [vmem:[%s162_s7] sm:$0x1] %vm263_vm3, %v261_v61 }
 0x1e3   : > { %407 = shalt.err (!%p404_p3)
}
 0x1e4   : > { %s408_s27 = scalar_lea.hbm %s555_s19, 16  ;;  %s412_s30 = scalar_lea.hbm %s602_s3, 32 }
 0x1e5   : > { %p409_p4 = scmp.ne.s32.totalorder %s555_s19, %s408_s27  ;;  %p413_p9 = scmp.lt.u32.totalorder %s555_s19, %s602_s3 }
 0x1e6   : > { %p414_p10 = scmp.lt.u32.totalorder %s412_s30, %s408_s27  ;;  %p416_p12 = scmp.lt.u32.totalorder %s408_s27, %s555_s19 }
 0x1e7   : > { %p410_p7 = pnand %p409_p4, %p518_p5 }
 0x1e8   : > { %p415_p11 = por %p414_p10, %p413_p9 }
 0x1e9   : > { %p411_p8 = pneg %p410_p7 }
 0x1ea   : > { %p417_p13 = por %p416_p12, %p415_p11 }
 0x1ec   : > { %p418_p0 = pnand %p417_p13, %p411_p8 }
 0x1ee   : > { %421 = shalt.err (!%p418_p0)
}
 0x1ef   : > { %348 = dma.vmem_to_hbm [thread:$0]  (%p518_p5), %s557_s10, 16, %s555_s19, %s266_s20  }
 0x1f0 PF: > { %p354_p1 = scmp.ge.s32.totalorder %s456_s15, 2  ;;  %s290_s6 = sand.u32 1, %s444_s12  }
 0x1f1   : > { %s291_s7 = scalar_lea.sflag [#allocation3], %s290_s6 }
 0x1f2   : > { %p351_p2 = pnand %p354_p1, %p522_p6 }
 0x1f4   : > { %439 = dma.done.wait (!%p351_p2), %s291_s7, 16  }
 0x1f5   : > { %441 = vsyncadd (!%p351_p2), %s291_s7, 4294967280  ;;  %p13_p3 = scmp.ge.s32.totalorder %s505_s18, 4   ;;  %s605_s12 = smov %s448_s13 }
 0x1f6   : > { %s606_s13 = smov %s452_s14  ;;  %s607_s14 = smov %s516_s21 }
 0x1f7   : > { %s608_s15 = smov %s505_s18  ;;  %15 = sbr.rel (!%p13_p3) target bundleno = 3 (0x3), region = 67 }
 0x1fe   :  { %295 = vsyncpa [#allocation3], 1 }
 0x1ff   :  { %297 = vsyncpa [#allocation3 + $0x1], 1 }

// kernel: fwd.16
= control target key start
LH: loop header
LB: loop body
LE: loop exit
PB: predicated region body
PF: predicated region fallthrough
CT: control target
= control target key end

     0   :  { %vm41_vm0 = vcmask 261120   ;;  %vm54_vm1 = vcmask 254976   ;;  %v547_v38 = vmov 0.0   ;;  %vm548_vm2 = vmmov 0   ;;  %s702_s0 = inlined_call_operand.vmem [shape: bf16[34,32], index: 0, kind: input, shape index: {}]   ;;  %s703_s3 = inlined_call_operand.vmem [shape: bf16[32,64], index: 3, kind: input, shape index: {}]   ;;  %s704_s5 = inlined_call_operand.vmem [shape: bf16[32,64], index: 5, kind: input, shape index: {}]   ;;  %s705_s1 = inlined_call_operand.vmem [shape: f32[1,32], index: 1, kind: input, shape index: {}]   ;;  %s706_s2 = inlined_call_operand.vmem [shape: f32[1,32], index: 2, kind: input, shape index: {}]   ;;  %s707_s4 = inlined_call_operand.vmem [shape: bf16[1,64], index: 4, kind: input, shape index: {}]   ;;  %s708_s6 = inlined_call_operand.vmem [shape: bf16[1,64], index: 6, kind: input, shape index: {}]   ;;  %s709_s7 = inlined_call_operand.vmem [shape: bf16[34,64], index: 7, kind: output, shape index: {}]  }
   0x1   :  { %v458_v0 = vld [vmem:[%s702_s0] sm:$0xff]   ;;  %v465_v1 = vld [vmem:[%s702_s0 + $0x8] sm:$0xff]   ;;  %v35_v6 = vld [vmem:[%s702_s0 + $0x10] sm:$0x1]  ;;  %476 = vmatprep.subr.bf16.mxu0 %v547_v38  ;;  %492 = vmatprep.subr.bf16.mxu1 %v547_v38  ;;  %vm154_vm3 = vcmask 257024   ;;  %vm159_vm4 = vcmask 253952  }
   0x2   :  { %v459_v2 = vunpack.c.l.bf16 %v458_v0  ;;  %v463_v3 = vunpack.c.l.bf16 %v465_v1  ;;  %v460_v4 = vunpack.c.h.bf16 %v458_v0  ;;  %v464_v5 = vunpack.c.h.bf16 %v465_v1  ;;  %v510_v39 = vld [vmem:[%s703_s3] sm:$0xff]   ;;  %v512_v41 = vld [vmem:[%s703_s3 + $0x8] sm:$0xff]   ;;  %480 = vmatprep.mubr.msk.bf16.mxu0 %vm548_vm2, %v547_v38  ;;  %496 = vmatprep.mubr.msk.bf16.mxu1 %vm548_vm2, %v547_v38 }
   0x3   :  { %v40_v11 = vunpack.c.l.bf16 %v35_v6  ;;  %v511_v40 = vld [vmem:[%s704_s5] sm:$0xff]   ;;  %477 = vmatpush3.bf16.msra.mxu0 %v510_v39  ;;  %v513_v42 = vld [vmem:[%s704_s5 + $0x8] sm:$0xff]   ;;  %vm406_vm5 = vcmask 519168   ;;  %vm411_vm6 = vcmask 516096  }
   0x4   :  { %v42_v7 = vsel %vm41_vm0, %v459_v2, 0.0  ;;  %v48_v8 = vsel %vm41_vm0, %v463_v3, 0.0  ;;  %v45_v9 = vsel %vm41_vm0, %v460_v4, 0.0  ;;  %v51_v10 = vsel %vm41_vm0, %v464_v5, 0.0  ;;  %493 = vmatpush3.bf16.msra.mxu1 %v511_v40  ;;  %478 = vmatprep.subr.bf16.mxu0 %v547_v38  ;;  %v417_v59 = vld [vmem:[%s705_s1] ss:$0 sm:$0xff] }
   0x5   :  { %43 = vadd.xlane.f32.xlu0 %v42_v7  ;;  %49 = vadd.xlane.f32.xlu1 %v48_v8  ;;  %v55_v12 = vsel %vm54_vm1, %v40_v11, 0.0  ;;  %v418_v61 = vld [vmem:[%s706_s2] ss:$0 sm:$0xff] }
   0x6   :  { %494 = vmatprep.subr.bf16.mxu1 %v547_v38 }
   0x7   :  { %479 = vmatpush3.bf16.msra.mxu0 %v512_v41 }
   0x8   :  { %495 = vmatpush3.bf16.msra.mxu1 %v513_v42 }
   0x9   :  { %46 = vadd.xlane.f32.xlu0 %v45_v9  ;;  %52 = vadd.xlane.f32.xlu1 %v51_v10 }
   0xd   :  { %56 = vadd.xlane.f32.xlu0 %v55_v12 }
  0x92   :  { %v44_v13 = vpop.xlane.xlu0 %43  ;;  %v50_v14 = vpop.xlane.xlu1 %49 }
  0x93   :  { %v59_v15 = vmul.f32 0.03125, %v44_v13  ;;  %v61_v16 = vmul.f32 0.03125, %v50_v14 }
  0x95   :  { %v603_v17 = vsub.f32 %v459_v2, %v59_v15  ;;  %v605_v18 = vsub.f32 %v463_v3, %v61_v16 }
  0x96   :  { %v47_v19 = vpop.xlane.xlu0 %46  ;;  %v53_v20 = vpop.xlane.xlu1 %52 }
  0x97   :  { %v60_v21 = vmul.f32 0.03125, %v47_v19  ;;  %v62_v22 = vmul.f32 0.03125, %v53_v20  ;;  %v69_v23 = vmul.f32 %v603_v17, %v603_v17  ;;  %v71_v24 = vmul.f32 %v605_v18, %v605_v18 }
  0x99   :  { %v611_v25 = vsub.f32 %v460_v4, %v60_v21  ;;  %v613_v26 = vsub.f32 %v464_v5, %v62_v22  ;;  %v74_v27 = vsel %vm41_vm0, %v69_v23, 0.0  ;;  %v80_v30 = vsel %vm41_vm0, %v71_v24, 0.0 }
  0x9a   :  { %75 = vadd.xlane.f32.xlu1 %v74_v27  ;;  %v57_v28 = vpop.xlane.xlu0 %56  ;;  %v172_v24 = vlaneseq }
  0x9b   :  { %v63_v29 = vmul.f32 0.03125, %v57_v28  ;;  %v70_v31 = vmul.f32 %v611_v25, %v611_v25  ;;  %v72_v32 = vmul.f32 %v613_v26, %v613_v26 }
  0x9d   :  { %v621_v33 = vsub.f32 %v40_v11, %v63_v29  ;;  %v77_v34 = vsel %vm41_vm0, %v70_v31, 0.0  ;;  %v83_v35 = vsel %vm41_vm0, %v72_v32, 0.0 }
  0x9e   :  { %81 = vadd.xlane.f32.xlu1 %v80_v30  ;;  %78 = vadd.xlane.f32.xlu0 %v77_v34 }
  0x9f   :  { %v73_v36 = vmul.f32 %v621_v33, %v621_v33 }
  0xa1   :  { %v86_v37 = vsel %vm54_vm1, %v73_v36, 0.0 }
  0xa2   :  { %84 = vadd.xlane.f32.xlu0 %v83_v35  ;;  %87 = vadd.xlane.f32.xlu1 %v86_v37 }
 0x127   :  { %v76_v43 = vpop.xlane.xlu1 %75 }
 0x128   :  { %v89_v44 = vmul.f32 0.03125, %v76_v43 }
 0x12a   :  { %v94_v45 = vadd.f32 1e-06, %v89_v44 }
 0x12b   :  { %v82_v46 = vpop.xlane.xlu1 %81  ;;  %v79_v47 = vpop.xlane.xlu0 %78 }
 0x12c   :  { %517 = vrsqrt.f32 %v94_v45  ;;  %v91_v48 = vmul.f32 0.03125, %v82_v46  ;;  %v90_v49 = vmul.f32 0.03125, %v79_v47 }
 0x12e   :  { %v96_v50 = vadd.f32 1e-06, %v91_v48  ;;  %v95_v51 = vadd.f32 1e-06, %v90_v49 }
 0x12f   :  { %v88_v52 = vpop.xlane.xlu1 %87  ;;  %v85_v53 = vpop.xlane.xlu0 %84 }
 0x130   :  { %519 = vrsqrt.f32 %v96_v50  ;;  %v93_v54 = vmul.f32 0.03125, %v88_v52  ;;  %v92_v55 = vmul.f32 0.03125, %v85_v53 }
 0x131   :  { %521 = vrsqrt.f32 %v95_v51 }
 0x132   :  { %v98_v56 = vadd.f32 1e-06, %v93_v54  ;;  %v97_v57 = vadd.f32 1e-06, %v92_v55 }
 0x134   :  { %523 = vrsqrt.f32 %v98_v56 }
 0x135   :  { %525 = vrsqrt.f32 %v97_v57 }
 0x136   :  { %v518_v58 = vpop.eup %517 }
 0x137   :  { %v104_v60 = vmul.f32 %v518_v58, %v603_v17 }
 0x139   :  { %v116_v62 = vmul.f32 %v417_v59, %v104_v60 }
 0x13a   :  { %v520_v63 = vpop.eup %519 }
 0x13b   :  { %v522_v0 = vpop.eup %521  ;;  %v128_v1 = vadd.f32 %v418_v61, %v116_v62  ;;  %v106_v2 = vmul.f32 %v520_v63, %v605_v18  ;;  %v271_v62 = vld [vmem:[%s708_s6] sm:$0x1] }
 0x13c   :  { %v105_v3 = vmul.f32 %v522_v0, %v611_v25  ;;  %v173_v25 = vshrl.u32 %v172_v24, 7 }
 0x13d   :  { %v447_v4 = vpack.c.bf16 %v128_v1, %v128_v1  ;;  %v118_v5 = vmul.f32 %v417_v59, %v106_v2 }
 0x13e   :  { %v524_v6 = vpop.eup %523  ;;  %v117_v7 = vmul.f32 %v417_v59, %v105_v3  ;;  %v174_v28 = vsub.s32 0, %v173_v25 }
 0x13f   :  { %v526_v8 = vpop.eup %525  ;;  %155 = vst.msk [vmem:[#allocation2] sm:$0xf] %vm154_vm3, %v447_v4  ;;  %v130_v9 = vadd.f32 %v418_v61, %v118_v5  ;;  %v108_v10 = vmul.f32 %v524_v6, %v621_v33  ;;  %v272_v5 = vunpack.c.l.bf16 %v271_v62 }
 0x140   :  { %v129_v11 = vadd.f32 %v418_v61, %v117_v7  ;;  %v107_v12 = vmul.f32 %v526_v8, %v613_v26  ;;  %v170_v26 = vld [vmem:[%s707_s4] sm:$0x1] }
 0x141   :  { %v449_v13 = vpack.c.bf16 %v130_v9, %v130_v9  ;;  %v120_v14 = vmul.f32 %v417_v59, %v108_v10  ;;  %v171_v27 = vunpack.c.l.bf16 %v170_v26  ;;  %v276_v9 = vrot.slane %v272_v5, %v174_v28 }
 0x142   :  { %v448_v15 = vpack.c.bf16 %v129_v11, %v129_v11  ;;  %v119_v16 = vmul.f32 %v417_v59, %v107_v12 }
 0x143   :  { %157 = vst.msk [vmem:[#allocation2 + $0x8] sm:$0xf] %vm154_vm3, %v449_v13  ;;  %v132_v17 = vadd.f32 %v418_v61, %v120_v14  ;;  %v175_v29 = vrot.slane %v171_v27, %v174_v28 }
 0x144   :  { %156 = vst.msk [vmem:[#allocation2 + $0x4] sm:$0xf] %vm154_vm3, %v448_v15  ;;  %v131_v18 = vadd.f32 %v418_v61, %v119_v16 }
 0x145   :  { %v451_v19 = vpack.c.bf16 %v132_v17, %v132_v17 }
 0x146   :  { %v450_v20 = vpack.c.bf16 %v131_v18, %v131_v18 }
 0x147   :  { %160 = vst.msk [vmem:[#allocation2 + $0x10] sm:$0x1] %vm159_vm4, %v451_v19 }
 0x148   :  { %158 = vst.msk [vmem:[#allocation2 + $0xc] sm:$0xf] %vm154_vm3, %v450_v20 }
 0x14b   :  { %v514_v21 = vld [vmem:[#allocation2] sm:$0xff]  }
 0x14c   :  { %481 = vmatmul.mubr.msk.bf16.vlgmr.msra.gmra.mrb[0].mxu0 %vm41_vm0, %v514_v21  ;;  %497 = vmatmul.mubr.msk.bf16.vlgmr.msra.gmra.mrb[0].mxu1 %vm41_vm0, %v514_v21 }
 0x14d   :  { %484 = vmatprep.mubr.msk.bf16.mxu0 %vm548_vm2, %v547_v38  ;;  %500 = vmatprep.mubr.msk.bf16.mxu1 %vm548_vm2, %v547_v38 }
 0x14e   :  { %v516_v23 = vld [vmem:[#allocation2 + $0x10] ss:$0 sps:$4 sm:$0x11]  }
 0x14f   :  { %v515_v22 = vld [vmem:[#allocation2 + $0x8] sm:$0xff]  }
 0x154   :  { %485 = vmatmul.mubr.msk.bf16.gmra.mrb[4].mxu0 %vm41_vm0, %v515_v22  ;;  %501 = vmatmul.mubr.msk.bf16.gmra.mrb[4].mxu1 %vm41_vm0, %v515_v22 }
 0x155   :  { %488 = vmatprep.mubr.msk.bf16.mxu0 %vm548_vm2, %v547_v38  ;;  %504 = vmatprep.mubr.msk.bf16.mxu1 %vm548_vm2, %v547_v38 }
 0x15c   :  { %489 = vmatmul.mubr.msk.bf16.gmra.mrb[8].mxu0 %vm41_vm0, %v516_v23  ;;  %505 = vmatmul.mubr.msk.bf16.gmra.mrb[8].mxu1 %vm41_vm0, %v516_v23 }
 0x21f   :  { %v245_v30 = vpop.f32.mrb[0].mxu0  ;;  %v323_v31 = vpop.f32.mrb[0].mxu1 }
 0x220   :  { %v246_v32 = vadd.f32 %v245_v30, %v175_v29  ;;  %v482_v33 = vpop.f32.mrb[1].mxu0  ;;  %v498_v34 = vpop.f32.mrb[1].mxu1  ;;  %v324_v13 = vadd.f32 %v323_v31, %v276_v9 }
 0x221   :  { %v248_v35 = vpop.f32.mrb[2].mxu0  ;;  %v326_v36 = vpop.f32.mrb[2].mxu1 }
 0x222   :  { %v437_v37 = vmul.f32 -1.442695, %v246_v32  ;;  %v249_v38 = vadd.f32 %v248_v35, %v175_v29  ;;  %v483_v39 = vpop.f32.mrb[3].mxu0  ;;  %v499_v40 = vpop.f32.mrb[3].mxu1  ;;  %v327_v18 = vadd.f32 %v326_v36, %v276_v9 }
 0x224   :  { %527 = vpow2.f32 %v437_v37  ;;  %v438_v41 = vmul.f32 -1.442695, %v249_v38 }
 0x226   :  { %529 = vpow2.f32 %v438_v41 }
 0x227   :  { %v253_v42 = vpop.f32.mrb[4].mxu0  ;;  %v331_v43 = vpop.f32.mrb[4].mxu1 }
 0x228   :  { %v254_v44 = vadd.f32 %v253_v42, %v175_v29  ;;  %v486_v45 = vpop.f32.mrb[5].mxu0  ;;  %v502_v46 = vpop.f32.mrb[5].mxu1  ;;  %v332_v25 = vadd.f32 %v331_v43, %v276_v9 }
 0x229   :  { %v256_v47 = vpop.f32.mrb[6].mxu0  ;;  %v334_v48 = vpop.f32.mrb[6].mxu1 }
 0x22a   :  { %v439_v49 = vmul.f32 -1.442695, %v254_v44  ;;  %v257_v50 = vadd.f32 %v256_v47, %v175_v29  ;;  %v487_v51 = vpop.f32.mrb[7].mxu0  ;;  %v503_v52 = vpop.f32.mrb[7].mxu1 }
 0x22c   :  { %531 = vpow2.f32 %v439_v49  ;;  %v440_v53 = vmul.f32 -1.442695, %v257_v50 }
 0x22e   :  { %v528_v54 = vpop.eup %527  ;;  %533 = vpow2.f32 %v440_v53 }
 0x22f   :  { %v360_v55 = vadd.f32 1.0, %v528_v54  ;;  %v261_v56 = vpop.f32.mrb[8].mxu0  ;;  %v339_v57 = vpop.f32.mrb[8].mxu1 }
 0x230   :  { %v530_v58 = vpop.eup %529  ;;  %v262_v59 = vadd.f32 %v261_v56, %v175_v29  ;;  %v490_v60 = vpop.f32.mrb[9].mxu0  ;;  %v335_v29 = vadd.f32 %v334_v48, %v276_v9  ;;  %v340_v35 = vadd.f32 %v339_v57, %v276_v9 }
 0x231   :  { %v506_v61 = vpop.f32.mrb[9].mxu1  ;;  %535 = vrcp.f32 %v360_v55  ;;  %v361_v63 = vadd.f32 1.0, %v530_v58  ;;  %v264_v0 = vpop.f32.mrb[10].mxu0 }
 0x232   :  { %v342_v1 = vpop.f32.mrb[10].mxu1  ;;  %v441_v2 = vmul.f32 -1.442695, %v262_v59  ;;  %v491_v3 = vpop.f32.mrb[11].mxu0 }
 0x233   :  { %v507_v4 = vpop.f32.mrb[11].mxu1  ;;  %537 = vrcp.f32 %v361_v63 }
 0x234   :  { %539 = vpow2.f32 %v441_v2 }
 0x236   :  { %v532_v6 = vpop.eup %531 }
 0x237   :  { %v362_v7 = vadd.f32 1.0, %v532_v6 }
 0x238   :  { %v534_v8 = vpop.eup %533 }
 0x239   :  { %541 = vrcp.f32 %v362_v7  ;;  %v363_v10 = vadd.f32 1.0, %v534_v8 }
 0x23b   :  { %v536_v11 = vpop.eup %535  ;;  %543 = vrcp.f32 %v363_v10 }
 0x23c   :  { %v375_v12 = vmul.f32 %v536_v11, %v246_v32 }
 0x23d   :  { %v538_v14 = vpop.eup %537 }
 0x23e   :  { %v540_v15 = vpop.eup %539  ;;  %v380_v16 = vmul.f32 %v375_v12, %v324_v13  ;;  %v376_v17 = vmul.f32 %v538_v14, %v249_v38 }
 0x23f   :  { %v364_v19 = vadd.f32 1.0, %v540_v15 }
 0x240   :  { %v452_v20 = vpack.c.bf16 %v380_v16, %v380_v16  ;;  %v381_v21 = vmul.f32 %v376_v17, %v327_v18 }
 0x241   :  { %545 = vrcp.f32 %v364_v19 }
 0x242   :  { %407 = vst.msk [vmem:[%s709_s7] sm:$0xf] %vm406_vm5, %v452_v20  ;;  %v453_v22 = vpack.c.bf16 %v381_v21, %v381_v21 }
 0x243   :  { %v542_v23 = vpop.eup %541 }
 0x244   :  { %408 = vst.msk [vmem:[%s709_s7 + $0x4] sm:$0xf] %vm406_vm5, %v453_v22  ;;  %v377_v24 = vmul.f32 %v542_v23, %v254_v44 }
 0x245   :  { %v544_v26 = vpop.eup %543 }
 0x246   :  { %v382_v27 = vmul.f32 %v377_v24, %v332_v25  ;;  %v378_v28 = vmul.f32 %v544_v26, %v257_v50 }
 0x248   :  { %v454_v30 = vpack.c.bf16 %v382_v27, %v382_v27  ;;  %v383_v31 = vmul.f32 %v378_v28, %v335_v29 }
 0x24a   :  { %409 = vst.msk [vmem:[%s709_s7 + $0x8] sm:$0xf] %vm406_vm5, %v454_v30  ;;  %v455_v32 = vpack.c.bf16 %v383_v31, %v383_v31 }
 0x24b   :  { %v546_v33 = vpop.eup %545 }
 0x24c   :  { %410 = vst.msk [vmem:[%s709_s7 + $0xc] sm:$0xf] %vm406_vm5, %v455_v32  ;;  %v379_v34 = vmul.f32 %v546_v33, %v262_v59 }
 0x24e   :  { %v384_v36 = vmul.f32 %v379_v34, %v340_v35 }
 0x250   :  { %v456_v37 = vpack.c.bf16 %v384_v36, %v384_v36 }
 0x252   :  { %412 = vst.msk [vmem:[%s709_s7 + $0x10] sm:$0x1] %vm411_vm6, %v456_v37 }

</bundles_post_ra>
